<compile_context>
chip_gen: v7x
topology: tpu7x:2x2x1
jax: 0.10.0
libtpu: 0.0.40
codegen_flags: <defaults>
</compile_context>

<pallas_src>
import jax
import jax.numpy as jnp
from jax.experimental import pallas as pl
from jax.experimental.pallas import tpu as pltpu


def _round_up(x, m):
    return ((x + m - 1) // m) * m


def qnet_residual_kernel(x_ref, w1_ref, b1_ref, w2_ref, b2_ref,
                         w3_ref, b3_ref, w4_ref, b4_ref, o_ref):
    cdt = w1_ref.dtype                        # compute dtype (bf16 or f32), static
    # f32 operands => true-f32 multi-pass on the MXU; bf16 operands => default.
    prec = jax.lax.Precision.HIGHEST if cdt == jnp.float32 else None

    # state streams as f32; cast to the MXU compute dtype on the VPU (hidden
    # under the matmul) instead of paying a separate wrapper-side HBM pass.
    x = x_ref[...].astype(cdt)                # (TB, state_size)

    # fc1 + relu  (f32 accumulate on the MXU, f32 bias/activation)
    x1 = jnp.dot(x, w1_ref[...], preferred_element_type=jnp.float32,
                 precision=prec) + b1_ref[...]
    x1 = jnp.maximum(x1, 0.0)

    # fc2 + relu, residual add of x1 (residual stays f32)
    x2 = jnp.dot(x1.astype(cdt), w2_ref[...], preferred_element_type=jnp.float32,
                 precision=prec) + b2_ref[...]
    x2 = jnp.maximum(x2, 0.0) + x1

    # fc3 + relu, residual add of x2
    x3 = jnp.dot(x2.astype(cdt), w3_ref[...], preferred_element_type=jnp.float32,
                 precision=prec) + b3_ref[...]
    x3 = jnp.maximum(x3, 0.0) + x2

    # fc4 (no activation): lane-dense (TB, 128) MXU result, then store only the
    # real action lanes -> tiny HBM writeback (masked vst, negligible cost).
    y = jnp.dot(x3.astype(cdt), w4_ref[...], preferred_element_type=jnp.float32,
                precision=prec) + b4_ref[...]
    o_ref[...] = y[:, :o_ref.shape[-1]].astype(o_ref.dtype)


def init_params(key, state_size, action_size, fc1=64, fc2=64, fc3=64):
    """PyTorch nn.Linear-style init (U[-1/sqrt(in), 1/sqrt(in)]), stored (in, out)."""
    dims = [(state_size, fc1), (fc1, fc2), (fc2, fc3), (fc3, action_size)]
    params = {}
    for i, (fan_in, fan_out) in enumerate(dims, start=1):
        key, kw, kb = jax.random.split(key, 3)
        bound = 1.0 / jnp.sqrt(jnp.float32(fan_in))
        params[f"w{i}"] = jax.random.uniform(
            kw, (fan_in, fan_out), jnp.float32, -bound, bound)
        params[f"b{i}"] = jax.random.uniform(
            kb, (1, fan_out), jnp.float32, -bound, bound)
    return params


def prepare_kernel_params(params, compute_dtype=jnp.bfloat16, pad_to=128):
    """Zero-pad hidden/output feature dims to `pad_to` (=128: do NOT raise to 256)
    lanes and cast weights to the MXU compute dtype.  Biases stay f32 (added after
    the f32 accumulate).  The state (input) feature dim of W1 is NOT padded so the
    streamed bytes stay minimal.  Padded rows/cols/lanes are exactly zero, so the
    real output lanes are unaffected."""
    kp = {}
    for i in range(1, 5):
        w = params[f"w{i}"]
        b = params[f"b{i}"]
        fin, fout = w.shape
        fin_p = fin if i == 1 else _round_up(fin, pad_to)
        fout_p = _round_up(fout, pad_to)
        wp = jnp.zeros((fin_p, fout_p), compute_dtype)
        wp = wp.at[:fin, :fout].set(w.astype(compute_dtype))
        bp = jnp.zeros((1, fout_p), jnp.float32)
        bp = bp.at[:, :fout].set(b.astype(jnp.float32))
        kp[f"w{i}"] = wp
        kp[f"b{i}"] = bp
    return kp


def _choose_block_rows(B, block_rows, compute_dtype):
    """Batch tile: big enough to amortize ~0.35 us/step pipeline overhead, small
    enough to keep >= ~8 grid steps for v7x 2-TC balancing, never (much) larger
    than the batch, and 16-row aligned for bf16 vreg packing (8 for f32)."""
    row_align = 16 if compute_dtype == jnp.bfloat16 else 8
    tb = min(block_rows,
             _round_up(pl.cdiv(B, 8), row_align),   # aim for >= ~8 grid steps
             _round_up(B, 8))                        # don't exceed the batch
    return max(tb, 8)


def qnetwork_residual(state, kparams, action_size, *, block_rows=4096):
    """state: (B, state_size) f32.  kparams: output of prepare_kernel_params.
    NOTE: on v5e prefer block_rows<=2048 (single vst slot); on v7x the >=8-step
    grid produced by _choose_block_rows keeps both TensorCores busy."""
    B, state_size = state.shape
    compute_dtype = kparams["w1"].dtype
    tb = _choose_block_rows(B, block_rows, compute_dtype)
    grid = pl.cdiv(B, tb)   # last block may be partial: output writes are masked,
                            # garbage input rows only feed masked-out rows.

    const = lambda i: (0, 0)                 # weights/biases: resident, fetched once
    out = pl.pallas_call(
        qnet_residual_kernel,
        out_shape=jax.ShapeDtypeStruct((B, action_size), jnp.float32),
        grid=(grid,),
        in_specs=[
            pl.BlockSpec((tb, state_size), lambda i: (i, 0)),   # streamed f32 state
            pl.BlockSpec(kparams["w1"].shape, const),
            pl.BlockSpec(kparams["b1"].shape, const),
            pl.BlockSpec(kparams["w2"].shape, const),
            pl.BlockSpec(kparams["b2"].shape, const),
            pl.BlockSpec(kparams["w3"].shape, const),
            pl.BlockSpec(kparams["b3"].shape, const),
            pl.BlockSpec(kparams["w4"].shape, const),
            pl.BlockSpec(kparams["b4"].shape, const),
        ],
        # Narrow (un-padded) output block: last dim == full array dim, so legal;
        # shrinks HBM writeback ~32x vs the old 128-lane f32 padded store.
        out_specs=pl.BlockSpec((tb, action_size), lambda i: (i, 0)),
        compiler_params=pltpu.CompilerParams(
            dimension_semantics=("parallel",),        # megacore sharding on v7x
            vmem_limit_bytes=32 * 1024 * 1024,        # safe on v5e/v6e/v7x
        ),
    )(state, kparams["w1"], kparams["b1"], kparams["w2"], kparams["b2"],
      kparams["w3"], kparams["b3"], kparams["w4"], kparams["b4"])

    return out


def reference_forward(state, p):
    """True-f32 reference (precision=HIGHEST matches the kernel's f32 MXU path)."""
    hi = jax.lax.Precision.HIGHEST
    mm = lambda a, w: jnp.dot(a, w, precision=hi)
    x1 = jax.nn.relu(mm(state, p["w1"]) + p["b1"])
    x2 = jax.nn.relu(mm(x1, p["w2"]) + p["b2"]) + x1
    x3 = jax.nn.relu(mm(x2, p["w3"]) + p["b3"]) + x2
    return mm(x3, p["w4"]) + p["b4"]


def reference_forward_lowp(state, p, dt):
    """Reference that mirrors the kernel's low-precision MXU operands exactly."""
    def mm(a, w):
        return jnp.dot(a.astype(dt), w.astype(dt), preferred_element_type=jnp.float32)
    x1 = jax.nn.relu(mm(state, p["w1"]) + p["b1"])
    x2 = jax.nn.relu(mm(x1, p["w2"]) + p["b2"]) + x1
    x3 = jax.nn.relu(mm(x2, p["w3"]) + p["b3"]) + x2
    return mm(x3, p["w4"]) + p["b4"]


if __name__ == "__main__":
    key = jax.random.PRNGKey(0)
    # Small demo shapes. NOTE: at B=8 the kernel is pure overhead; batch many
    # states (replay-buffer minibatch / vmapped envs) before calling for real use.
    batch, state_size, action_size = 8, 16, 4

    k_state, k_params = jax.random.split(key)
    state = jax.random.normal(k_state, (batch, state_size), jnp.float32)
    params = init_params(k_params, state_size, action_size)

    # --- f32 compute path: exact PyTorch semantics (HIGHEST-precision MXU) ---
    kp_f32 = prepare_kernel_params(params, compute_dtype=jnp.float32)
    out_f32 = jax.block_until_ready(qnetwork_residual(state, kp_f32, action_size))
    ref = reference_forward(state, params)
    assert out_f32.shape == (batch, action_size)
    assert jnp.allclose(out_f32, ref, atol=1e-4, rtol=1e-4), "f32 mismatch vs reference"

    # --- bf16 MXU path (recommended on v6e/v7x): f32 accumulate + f32 residuals ---
    kp_bf16 = prepare_kernel_params(params, compute_dtype=jnp.bfloat16)
    out_bf16 = jax.block_until_ready(qnetwork_residual(state, kp_bf16, action_size))
    ref_bf16 = reference_forward_lowp(state, params, jnp.bfloat16)
    assert out_bf16.shape == (batch, action_size)
    assert jnp.allclose(out_bf16, ref_bf16, atol=1e-2, rtol=1e-2), "bf16 mismatch vs matched-precision reference"
    assert jnp.allclose(out_bf16, ref, atol=1e-1, rtol=1e-1), "bf16 drifted too far from f32 reference"

    print("KERNEL_OK")
</pallas_src>

<mosaic_0001>
module attributes {stable_mosaic.version = 11 : i64} {
  func.func @qnet_residual_kernel(%arg0: i32, %arg1: memref<8x16xf32, #tpu.memory_space<vmem>>, %arg2: memref<16x128xf32, #tpu.memory_space<vmem>>, %arg3: memref<1x128xf32, #tpu.memory_space<vmem>>, %arg4: memref<128x128xf32, #tpu.memory_space<vmem>>, %arg5: memref<1x128xf32, #tpu.memory_space<vmem>>, %arg6: memref<128x128xf32, #tpu.memory_space<vmem>>, %arg7: memref<1x128xf32, #tpu.memory_space<vmem>>, %arg8: memref<128x128xf32, #tpu.memory_space<vmem>>, %arg9: memref<1x128xf32, #tpu.memory_space<vmem>>, %arg10: memref<8x4xf32, #tpu.memory_space<vmem>>) attributes {dimension_semantics = [#tpu.dimension_semantics<parallel>], iteration_bounds = array<i64: 1>, scalar_prefetch = 0 : i64, scratch_operands = 0 : i64, tpu.core_type = #tpu.core_type<tc>, window_params = [{transform_indices = @transform_0, window_bounds = array<i64: 8, 16>}, {pipeline_mode = #tpu.pipeline_mode<synchronous>, transform_indices = @transform_1, window_bounds = array<i64: 16, 128>}, {pipeline_mode = #tpu.pipeline_mode<synchronous>, transform_indices = @transform_2, window_bounds = array<i64: 1, 128>}, {pipeline_mode = #tpu.pipeline_mode<synchronous>, transform_indices = @transform_3, window_bounds = array<i64: 128, 128>}, {pipeline_mode = #tpu.pipeline_mode<synchronous>, transform_indices = @transform_4, window_bounds = array<i64: 1, 128>}, {pipeline_mode = #tpu.pipeline_mode<synchronous>, transform_indices = @transform_5, window_bounds = array<i64: 128, 128>}, {pipeline_mode = #tpu.pipeline_mode<synchronous>, transform_indices = @transform_6, window_bounds = array<i64: 1, 128>}, {pipeline_mode = #tpu.pipeline_mode<synchronous>, transform_indices = @transform_7, window_bounds = array<i64: 128, 128>}, {pipeline_mode = #tpu.pipeline_mode<synchronous>, transform_indices = @transform_8, window_bounds = array<i64: 1, 128>}, {transform_indices = @transform_9, window_bounds = array<i64: 8, 4>}]} {
    %c0 = arith.constant 0 : index
    %c0_0 = arith.constant 0 : index
    %0 = vector.load %arg1[%c0, %c0_0] : memref<8x16xf32, #tpu.memory_space<vmem>>, vector<8x16xf32>
    %c0_1 = arith.constant 0 : index
    %c0_2 = arith.constant 0 : index
    %1 = vector.load %arg2[%c0_1, %c0_2] : memref<16x128xf32, #tpu.memory_space<vmem>>, vector<16x128xf32>
    %cst = arith.constant dense<0.000000e+00> : vector<8x128xf32>
    %2 = tpu.matmul %0, %1, %cst {dimension_numbers = #tpu.dot_dimension_numbers<[1], [0], [0], [1], [0, 0, 1, 1], [], []>, precision = #tpu.contract_precision<fp32>} : vector<8x16xf32>, vector<16x128xf32>, vector<8x128xf32> -> vector<8x128xf32>
    %c0_3 = arith.constant 0 : index
    %c0_4 = arith.constant 0 : index
    %3 = vector.load %arg3[%c0_3, %c0_4] : memref<1x128xf32, #tpu.memory_space<vmem>>, vector<1x128xf32>
    %4 = vector.broadcast %3 : vector<1x128xf32> to vector<8x128xf32>
    %5 = arith.addf %2, %4 : vector<8x128xf32>
    %cst_5 = arith.constant 0.000000e+00 : f32
    %6 = vector.broadcast %cst_5 : f32 to vector<8x128xf32>
    %7 = arith.maximumf %5, %6 : vector<8x128xf32>
    %c0_6 = arith.constant 0 : index
    %c0_7 = arith.constant 0 : index
    %8 = vector.load %arg4[%c0_6, %c0_7] : memref<128x128xf32, #tpu.memory_space<vmem>>, vector<128x128xf32>
    %cst_8 = arith.constant dense<0.000000e+00> : vector<8x128xf32>
    %9 = tpu.matmul %7, %8, %cst_8 {dimension_numbers = #tpu.dot_dimension_numbers<[1], [0], [0], [1], [0, 0, 1, 1], [], []>, precision = #tpu.contract_precision<fp32>} : vector<8x128xf32>, vector<128x128xf32>, vector<8x128xf32> -> vector<8x128xf32>
    %c0_9 = arith.constant 0 : index
    %c0_10 = arith.constant 0 : index
    %10 = vector.load %arg5[%c0_9, %c0_10] : memref<1x128xf32, #tpu.memory_space<vmem>>, vector<1x128xf32>
    %11 = vector.broadcast %10 : vector<1x128xf32> to vector<8x128xf32>
    %12 = arith.addf %9, %11 : vector<8x128xf32>
    %cst_11 = arith.constant 0.000000e+00 : f32
    %13 = vector.broadcast %cst_11 : f32 to vector<8x128xf32>
    %14 = arith.maximumf %12, %13 : vector<8x128xf32>
    %15 = arith.addf %14, %7 : vector<8x128xf32>
    %c0_12 = arith.constant 0 : index
    %c0_13 = arith.constant 0 : index
    %16 = vector.load %arg6[%c0_12, %c0_13] : memref<128x128xf32, #tpu.memory_space<vmem>>, vector<128x128xf32>
    %cst_14 = arith.constant dense<0.000000e+00> : vector<8x128xf32>
    %17 = tpu.matmul %15, %16, %cst_14 {dimension_numbers = #tpu.dot_dimension_numbers<[1], [0], [0], [1], [0, 0, 1, 1], [], []>, precision = #tpu.contract_precision<fp32>} : vector<8x128xf32>, vector<128x128xf32>, vector<8x128xf32> -> vector<8x128xf32>
    %c0_15 = arith.constant 0 : index
    %c0_16 = arith.constant 0 : index
    %18 = vector.load %arg7[%c0_15, %c0_16] : memref<1x128xf32, #tpu.memory_space<vmem>>, vector<1x128xf32>
    %19 = vector.broadcast %18 : vector<1x128xf32> to vector<8x128xf32>
    %20 = arith.addf %17, %19 : vector<8x128xf32>
    %cst_17 = arith.constant 0.000000e+00 : f32
    %21 = vector.broadcast %cst_17 : f32 to vector<8x128xf32>
    %22 = arith.maximumf %20, %21 : vector<8x128xf32>
    %23 = arith.addf %22, %15 : vector<8x128xf32>
    %c0_18 = arith.constant 0 : index
    %c0_19 = arith.constant 0 : index
    %24 = vector.load %arg8[%c0_18, %c0_19] : memref<128x128xf32, #tpu.memory_space<vmem>>, vector<128x128xf32>
    %cst_20 = arith.constant dense<0.000000e+00> : vector<8x128xf32>
    %25 = tpu.matmul %23, %24, %cst_20 {dimension_numbers = #tpu.dot_dimension_numbers<[1], [0], [0], [1], [0, 0, 1, 1], [], []>, precision = #tpu.contract_precision<fp32>} : vector<8x128xf32>, vector<128x128xf32>, vector<8x128xf32> -> vector<8x128xf32>
    %c0_21 = arith.constant 0 : index
    %c0_22 = arith.constant 0 : index
    %26 = vector.load %arg9[%c0_21, %c0_22] : memref<1x128xf32, #tpu.memory_space<vmem>>, vector<1x128xf32>
    %27 = vector.broadcast %26 : vector<1x128xf32> to vector<8x128xf32>
    %28 = arith.addf %25, %27 : vector<8x128xf32>
    %29 = vector.extract_strided_slice %28 {offsets = [0, 0], sizes = [8, 4], strides = [1, 1]} : vector<8x128xf32> to vector<8x4xf32>
    %c0_23 = arith.constant 0 : index
    %c0_24 = arith.constant 0 : index
    %30 = vector.load %arg10[%c0_23, %c0_24] : memref<8x4xf32, #tpu.memory_space<vmem>>, vector<8x4xf32>
    tpu.vector_store %arg10[%c0_23, %c0_24], %29 {strides = array<i32>} : memref<8x4xf32, #tpu.memory_space<vmem>>, vector<8x4xf32>,
    return
  }
  func.func @transform_0(%arg0: i32) -> (i32, i32) {
    %c0_i32 = arith.constant 0 : i32
    %c0_i32_0 = arith.constant 0 : i32
    return %arg0, %c0_i32 : i32, i32
  }
  func.func @transform_1(%arg0: i32) -> (i32, i32) {
    %c0_i32 = arith.constant 0 : i32
    %c0_i32_0 = arith.constant 0 : i32
    %c0_i32_1 = arith.constant 0 : i32
    return %c0_i32, %c0_i32_0 : i32, i32
  }
  func.func @transform_2(%arg0: i32) -> (i32, i32) {
    %c0_i32 = arith.constant 0 : i32
    %c0_i32_0 = arith.constant 0 : i32
    %c0_i32_1 = arith.constant 0 : i32
    return %c0_i32, %c0_i32_0 : i32, i32
  }
  func.func @transform_3(%arg0: i32) -> (i32, i32) {
    %c0_i32 = arith.constant 0 : i32
    %c0_i32_0 = arith.constant 0 : i32
    %c0_i32_1 = arith.constant 0 : i32
    return %c0_i32, %c0_i32_0 : i32, i32
  }
  func.func @transform_4(%arg0: i32) -> (i32, i32) {
    %c0_i32 = arith.constant 0 : i32
    %c0_i32_0 = arith.constant 0 : i32
    %c0_i32_1 = arith.constant 0 : i32
    return %c0_i32, %c0_i32_0 : i32, i32
  }
  func.func @transform_5(%arg0: i32) -> (i32, i32) {
    %c0_i32 = arith.constant 0 : i32
    %c0_i32_0 = arith.constant 0 : i32
    %c0_i32_1 = arith.constant 0 : i32
    return %c0_i32, %c0_i32_0 : i32, i32
  }
  func.func @transform_6(%arg0: i32) -> (i32, i32) {
    %c0_i32 = arith.constant 0 : i32
    %c0_i32_0 = arith.constant 0 : i32
    %c0_i32_1 = arith.constant 0 : i32
    return %c0_i32, %c0_i32_0 : i32, i32
  }
  func.func @transform_7(%arg0: i32) -> (i32, i32) {
    %c0_i32 = arith.constant 0 : i32
    %c0_i32_0 = arith.constant 0 : i32
    %c0_i32_1 = arith.constant 0 : i32
    return %c0_i32, %c0_i32_0 : i32, i32
  }
  func.func @transform_8(%arg0: i32) -> (i32, i32) {
    %c0_i32 = arith.constant 0 : i32
    %c0_i32_0 = arith.constant 0 : i32
    %c0_i32_1 = arith.constant 0 : i32
    return %c0_i32, %c0_i32_0 : i32, i32
  }
  func.func @transform_9(%arg0: i32) -> (i32, i32) {
    %c0_i32 = arith.constant 0 : i32
    %c0_i32_0 = arith.constant 0 : i32
    return %arg0, %c0_i32 : i32, i32
  }
}

</mosaic_0001>

<bundles_post_ra>
// kernel: tpu_custom_call.1
= control target key start
LH: loop header
LB: loop body
LE: loop exit
PB: predicated region body
PF: predicated region fallthrough
CT: control target
= control target key end

     0   :  { %14 = vsyncpa [#allocation3], 0  ;;  %s5227_s0 = inlined_call_operand.hbm [shape: f32[8,16], index: 0, kind: input, shape index: {}]   ;;  %s5228_s1 = inlined_call_operand.hbm [shape: f32[16,128], index: 1, kind: input, shape index: {}]   ;;  %s5229_s2 = inlined_call_operand.vmem [shape: f32[1,128], index: 2, kind: input, shape index: {}]   ;;  %s5230_s3 = inlined_call_operand.hbm [shape: f32[128,128], index: 3, kind: input, shape index: {}]   ;;  %s5231_s4 = inlined_call_operand.vmem [shape: f32[1,128], index: 4, kind: input, shape index: {}]   ;;  %s5232_s5 = inlined_call_operand.hbm [shape: f32[128,128], index: 5, kind: input, shape index: {}]   ;;  %s5233_s6 = inlined_call_operand.vmem [shape: f32[1,128], index: 6, kind: input, shape index: {}]   ;;  %s5234_s7 = inlined_call_operand.hbm [shape: f32[128,128], index: 7, kind: input, shape index: {}]   ;;  %s5235_s8 = inlined_call_operand.vmem [shape: f32[1,128], index: 8, kind: input, shape index: {}]   ;;  %s5236_s9 = inlined_call_operand.vmem [shape: f32[8,4], index: 9, kind: output, shape index: {}]  }
   0x1   :  { %15 = vsyncpa [#allocation5], 0 }
   0x2   :  { %16 = vsyncpa [#allocation8], 0  ;;  %s4195_s30 = smov [#allocation4]   ;;  %s4079_s13 = scalar_lea.hbm %s5228_s1, 256 }
   0x3   :  { %s32_s10 = sshll.u32 %s4195_s30, 4  ;;  %p4080_p0 = scmp.ne.s32.totalorder %s5228_s1, %s4079_s13  ;;  %s33_s10 = int_to_ptr.vmem [resolvable:$true] %s32_s10 }
   0x4   :  { %p4083_p1 = scmp.lt.u32.totalorder %s4079_s13, %s5228_s1 }
   0x6   :  { %p4085_p2 = pnand %p4083_p1, %p4080_p0 }
   0x8   :  { %4088 = shalt.err (!%p4085_p2)
}
   0x9   :  { %s4089_s18 = scalar_lea.vmem %s33_s10, 256  ;;  %p4094_p4 = scmp.lt.s32.totalorder %s33_s10, %s33_s10 }
   0xa   :  { %p4090_p3 = scmp.ne.s32.totalorder %s33_s10, %s4089_s18  ;;  %p4095_p5 = scmp.lt.s32.totalorder %s4089_s18, %s4089_s18 }
   0xc   :  { %p4096_p6 = por %p4095_p5, %p4094_p4 }
   0xe   :  { %p4097_p7 = pnand %p4096_p6, %p4090_p3 }
  0x10   :  { %4100 = shalt.err (!%p4097_p7)
}
  0x11   :  { %s4196_s19 = smov 128   ;;  %s4197_s20 = smov 8  }
  0x12   :  { %38 = dma.hbm_to_vmem [thread:$0]  %s5228_s1, 256, %s33_s10, [#allocation5], %s4196_s19, %s4196_s19, %s4197_s20  }
  0x13   :  { %s4198_s23 = smov [#allocation7]   ;;  %s4199_s25 = smov [#allocation2]  }
  0x14   :  { %s60_s24 = sshll.u32 %s4198_s23, 4  ;;  %s23_s26 = sshll.u32 %s4199_s25, 4  ;;  %s61_s24 = int_to_ptr.vmem [resolvable:$true] %s60_s24  ;;  %s24_s26 = int_to_ptr.vmem [resolvable:$true] %s23_s26 }
  0x15   :  { %s4101_s29 = scalar_lea.hbm %s5232_s5, 2048 }
  0x16   :  { %p4102_p8 = scmp.ne.s32.totalorder %s5232_s5, %s4101_s29  ;;  %p4105_p9 = scmp.lt.u32.totalorder %s4101_s29, %s5232_s5 }
  0x18   :  { %p4107_p10 = pnand %p4105_p9, %p4102_p8 }
  0x1a   :  { %4110 = shalt.err (!%p4107_p10)
}
  0x1b   :  { %s4111_s1 = scalar_lea.vmem %s61_s24, 2048  ;;  %p4116_p12 = scmp.lt.s32.totalorder %s61_s24, %s61_s24 }
  0x1c   :  { %p4112_p11 = scmp.ne.s32.totalorder %s61_s24, %s4111_s1  ;;  %p4117_p13 = scmp.lt.s32.totalorder %s4111_s1, %s4111_s1 }
  0x1e   :  { %p4118_p0 = por %p4117_p13, %p4116_p12 }
  0x20   :  { %p4119_p1 = pnand %p4118_p0, %p4112_p11 }
  0x22   :  { %4122 = shalt.err (!%p4119_p1)
}
  0x23   :  { %66 = dma.hbm_to_vmem [thread:$0]  %s5232_s5, 2048, %s61_s24, [#allocation8], %s4196_s19, %s4196_s19, %s4197_s20  }
  0x24   :  { %s4123_s17 = scalar_lea.hbm %s5227_s0, 128 }
  0x25   :  { %p4124_p2 = scmp.ne.s32.totalorder %s5227_s0, %s4123_s17  ;;  %p4127_p3 = scmp.lt.u32.totalorder %s4123_s17, %s5227_s0 }
  0x27   :  { %p4129_p4 = pnand %p4127_p3, %p4124_p2 }
  0x29   :  { %4132 = shalt.err (!%p4129_p4)
}
  0x2a   :  { %s4133_s25 = scalar_lea.vmem %s24_s26, 128  ;;  %p4138_p6 = scmp.lt.s32.totalorder %s24_s26, %s24_s26 }
  0x2b   :  { %p4134_p5 = scmp.ne.s32.totalorder %s24_s26, %s4133_s25  ;;  %p4139_p7 = scmp.lt.s32.totalorder %s4133_s25, %s4133_s25 }
  0x2d   :  { %p4140_p8 = por %p4139_p7, %p4138_p6 }
  0x2f   :  { %p4141_p9 = pnand %p4140_p8, %p4134_p5 }
  0x31   :  { %4144 = shalt.err (!%p4141_p9)
}
  0x32   :  { %26 = dma.hbm_to_vmem [thread:$0]  %s5227_s0, 128, %s24_s26, [#allocation3]  }
  0x33   :  { %s4200_s27 = smov [#allocation6]   ;;  %s4201_s29 = smov [#allocation9]  }
  0x34   :  { %s46_s28 = sshll.u32 %s4200_s27, 4  ;;  %s74_s30 = sshll.u32 %s4201_s29, 4  ;;  %s47_s28 = int_to_ptr.vmem [resolvable:$true] %s46_s28  ;;  %s75_s30 = int_to_ptr.vmem [resolvable:$true] %s74_s30 }
  0x35   :  { %s4145_s13 = scalar_lea.hbm %s5230_s3, 2048 }
  0x36   :  { %p4146_p10 = scmp.ne.s32.totalorder %s5230_s3, %s4145_s13  ;;  %p4149_p11 = scmp.lt.u32.totalorder %s4145_s13, %s5230_s3 }
  0x38   :  { %p4151_p12 = pnand %p4149_p11, %p4146_p10 }
  0x3a   :  { %4154 = shalt.err (!%p4151_p12)
}
  0x3b   :  { %s4155_s0 = scalar_lea.vmem %s47_s28, 2048  ;;  %p4160_p0 = scmp.lt.s32.totalorder %s47_s28, %s47_s28 }
  0x3c   :  { %p4156_p13 = scmp.ne.s32.totalorder %s47_s28, %s4155_s0  ;;  %p4161_p1 = scmp.lt.s32.totalorder %s4155_s0, %s4155_s0 }
  0x3e   :  { %p4162_p2 = por %p4161_p1, %p4160_p0 }
  0x40   :  { %p4163_p3 = pnand %p4162_p2, %p4156_p13 }
  0x42   :  { %4166 = shalt.err (!%p4163_p3)
}
  0x43   :  { %52 = dma.hbm_to_vmem [thread:$0]  %s5230_s3, 2048, %s47_s28, [#allocation5], %s4196_s19, %s4196_s19, %s4197_s20  }
  0x44   :  { %s4167_s21 = scalar_lea.hbm %s5234_s7, 2048 }
  0x45   :  { %p4168_p4 = scmp.ne.s32.totalorder %s5234_s7, %s4167_s21  ;;  %p4171_p5 = scmp.lt.u32.totalorder %s4167_s21, %s5234_s7 }
  0x47   :  { %p4173_p6 = pnand %p4171_p5, %p4168_p4 }
  0x49   :  { %4176 = shalt.err (!%p4173_p6)
}
  0x4a   :  { %s4177_s24 = scalar_lea.vmem %s75_s30, 2048  ;;  %p4182_p8 = scmp.lt.s32.totalorder %s75_s30, %s75_s30 }
  0x4b   :  { %p4178_p7 = scmp.ne.s32.totalorder %s75_s30, %s4177_s24  ;;  %p4183_p9 = scmp.lt.s32.totalorder %s4177_s24, %s4177_s24 }
  0x4d   :  { %p4184_p10 = por %p4183_p9, %p4182_p8 }
  0x4f   :  { %p4185_p11 = pnand %p4184_p10, %p4178_p7 }
  0x51   :  { %4188 = shalt.err (!%p4185_p11)
}
  0x52   :  { %80 = dma.hbm_to_vmem [thread:$0]  %s5234_s7, 2048, %s75_s30, [#allocation8], %s4196_s19, %s4196_s19, %s4197_s20  }
  0x53   :  { %4189 = dma.done.wait [#allocation3], 128  }
  0x54   :  { %4190 = vsyncadd [#allocation3], 4294967168 }
  0x55   :  { %4191 = dma.done.wait [#allocation5], 2304  }
  0x56   :  { %4192 = vsyncadd [#allocation5], 4294964992 }
  0x57   :  { %4193 = dma.done.wait [#allocation8], 4096  }
  0x58   :  { %4194 = vsyncadd [#allocation8], 4294963200  ;;  %v5242_v0 = vmov 0.0|0.0   ;;  %vm4203_vm0 = vmmov 0   ;;  %v4204_v1 = vmov 0.0   ;;  %vm108_vm1 = vcmask 130048  }
  0x59   :  { %3586 = vmatprep.subr.bf16.mxu0 %v5242_v0  ;;  %2930 = vmatprep.mubr.msk.f32.mxu0 %vm4203_vm0, %v4204_v1  ;;  %v99_v2 = vld [vmem:[#allocation4] sm:$0xff]  ;;  %v100_v3 = vld [vmem:[#allocation4 + $0x8] sm:$0xff]  ;;  %v98_v4 = vld [vmem:[#allocation2] sm:$0xff]  ;;  %vm2568_vm2 = vcmask 31744  }
  0x5a   :  { %3577 = vmatprep.subr.bf16.mxu1 %v5242_v0  ;;  %2909 = vmatprep.mubr.msk.f32.mxu1 %vm4203_vm0, %v4204_v1  ;;  %v113_v5 = vand.u32 4294901760, %v99_v2  ;;  %v116_v6 = vand.u32 4294901760, %v100_v3  ;;  %v110_v7 = vsel %vm108_vm1, %v98_v4, 0  ;;  %v572_v8 = vld [vmem:[#allocation6] sm:$0xff]  ;;  %v573_v9 = vld [vmem:[#allocation6 + $0x8] sm:$0xff]  ;;  %v4333_v10 = vld [vmem:[#allocation6 + $0x10] sm:$0xff] }
  0x5b   :  { %v179_v11 = vand.u32 4294901760, %v110_v7  ;;  %v596_v12 = vand.u32 4294901760, %v572_v8  ;;  %v599_v13 = vand.u32 4294901760, %v573_v9  ;;  %v575_v14 = vld [vmem:[#allocation6 + $0x18] sm:$0xff]  ;;  %v602_v18 = vand.u32 4294901760, %v4333_v10  ;;  %v576_v19 = vld [vmem:[#allocation6 + $0x20] sm:$0xff] }
  0x5c   :  { %v3578_v15 = vpack.c.bf16 %v116_v6, %v113_v5  ;;  %v191_v16 = vsub.f32 %v99_v2, %v113_v5  ;;  %v198_v17 = vsub.f32 %v100_v3, %v116_v6  ;;  %v605_v23 = vand.u32 4294901760, %v575_v14  ;;  %v577_v24 = vld [vmem:[#allocation6 + $0x28] sm:$0xff]  ;;  %v578_v27 = vld [vmem:[#allocation6 + $0x30] sm:$0xff]  ;;  %v579_v28 = vld [vmem:[#allocation6 + $0x38] sm:$0xff] }
  0x5d   :  { %v180_v20 = vsub.f32 %v110_v7, %v179_v11  ;;  %v4336_v21 = vsub.f32 %v572_v8, %v596_v12  ;;  %v4338_v22 = vsub.f32 %v573_v9, %v599_v13  ;;  %v4343_v30 = vsub.f32 %v4333_v10, %v602_v18  ;;  %v580_v53 = vld [vmem:[#allocation6 + $0x40] sm:$0xff]  ;;  %v581_v54 = vld [vmem:[#allocation6 + $0x48] sm:$0xff]  ;;  %v582_v58 = vld [vmem:[#allocation6 + $0x50] sm:$0xff] }
  0x5e   :  { %3588 = vmatpush3.bf16.msra.mxu0 %v3578_v15  ;;  %3579 = vmatpush3.bf16.msra.mxu1 %v3578_v15  ;;  %v192_v25 = vand.u32 4294901760, %v191_v16  ;;  %v199_v26 = vand.u32 4294901760, %v198_v17  ;;  %v4345_v31 = vsub.f32 %v575_v14, %v605_v23  ;;  %v608_v32 = vand.u32 4294901760, %v576_v19  ;;  %v583_v59 = vld [vmem:[#allocation6 + $0x58] sm:$0xff]  ;;  %v584_v3 = vld [vmem:[#allocation6 + $0x60] sm:$0xff]  ;;  %v585_v4 = vld [vmem:[#allocation6 + $0x68] sm:$0xff] }
  0x5f   :  { %v181_v29 = vand.u32 4294901760, %v180_v20  ;;  %3580 = vmatprep.subr.bf16.mxu1 %v5242_v0  ;;  %3589 = vmatprep.subr.bf16.mxu0 %v5242_v0  ;;  %v611_v36 = vand.u32 4294901760, %v577_v24  ;;  %v614_v39 = vand.u32 4294901760, %v578_v27  ;;  %v617_v40 = vand.u32 4294901760, %v579_v28  ;;  %v586_v8 = vld [vmem:[#allocation6 + $0x70] sm:$0xff]  ;;  %v587_v9 = vld [vmem:[#allocation6 + $0x78] sm:$0xff] }
  0x60   :  { %v193_v33 = vsub.f32 %v191_v16, %v192_v25  ;;  %v200_v34 = vsub.f32 %v198_v17, %v199_v26  ;;  %v3590_v35 = vpack.c.bf16 %v199_v26, %v192_v25  ;;  %v4347_v38 = vsub.f32 %v576_v19, %v608_v32 }
  0x61   :  { %2931 = vmatmul.mubr.f32.vlgmr.msra.gmra.mrb[0].mxu0 %v181_v29  ;;  %v182_v37 = vsub.f32 %v180_v20, %v181_v29  ;;  %v4351_v43 = vsub.f32 %v577_v24, %v611_v36  ;;  %v4354_v45 = vsub.f32 %v578_v27, %v614_v39  ;;  %v4356_v46 = vsub.f32 %v579_v28, %v617_v40 }
  0x62   :  { %v194_v41 = vand.u32 4294901760, %v193_v33  ;;  %v201_v42 = vand.u32 4294901760, %v200_v34  ;;  %3591 = vmatpush3.bf16.msra.mxu0 %v3590_v35  ;;  %2937 = vmatprep.mubr.msk.f32.mxu0 %vm4203_vm0, %v4204_v1  ;;  %v3584_v48 = vpack.c.bf16 %v198_v17, %v191_v16  ;;  %v4367_v49 = vpack.c.bf16 %v599_v13, %v596_v12 }
  0x63   :  { %v183_v44 = vand.u32 4294901760, %v182_v37  ;;  %3592 = vmatprep.subr.bf16.mxu0 %v5242_v0  ;;  %v4373_v50 = vpack.c.bf16 %v605_v23, %v602_v18  ;;  %v4379_v51 = vpack.c.bf16 %v611_v36, %v608_v32  ;;  %v4387_v52 = vpack.c.bf16 %v617_v40, %v614_v39 }
  0x64   :  { %v3581_v47 = vpack.c.bf16 %v201_v42, %v194_v41  ;;  %v620_v55 = vand.u32 4294901760, %v580_v53  ;;  %v623_v56 = vand.u32 4294901760, %v581_v54  ;;  %v626_v62 = vand.u32 4294901760, %v582_v58 }
  0x65   :  { %2910 = vmatmul.mubr.f32.vlgmr.msra.gmra.mrb[0].mxu1 %v183_v44  ;;  %v629_v63 = vand.u32 4294901760, %v583_v59  ;;  %v632_v5 = vand.u32 4294901760, %v584_v3  ;;  %v635_v6 = vand.u32 4294901760, %v585_v4  ;;  %v638_v10 = vand.u32 4294901760, %v586_v8 }
  0x66   :  { %3582 = vmatpush3.bf16.msra.mxu1 %v3581_v47  ;;  %2916 = vmatprep.mubr.msk.f32.mxu1 %vm4203_vm0, %v4204_v1  ;;  %v4395_v57 = vpack.c.bf16 %v623_v56, %v620_v55  ;;  %v4397_v60 = vsub.f32 %v580_v53, %v620_v55  ;;  %v4399_v61 = vsub.f32 %v581_v54, %v623_v56  ;;  %v689_v19 = vand.u32 4294901760, %v4336_v21 }
  0x67   :  { %3583 = vmatprep.subr.bf16.mxu1 %v5242_v0  ;;  %v4405_v2 = vpack.c.bf16 %v629_v63, %v626_v62  ;;  %v4411_v7 = vpack.c.bf16 %v635_v6, %v632_v5  ;;  %v4419_v13 = vsub.f32 %v582_v58, %v626_v62  ;;  %v4421_v14 = vsub.f32 %v583_v59, %v629_v63 }
  0x68   :  { %v4425_v16 = vsub.f32 %v585_v4, %v635_v6  ;;  %v4428_v17 = vsub.f32 %v586_v8, %v638_v10  ;;  %v690_v24 = vsub.f32 %v4336_v21, %v689_v19  ;;  %v703_v28 = vand.u32 4294901760, %v4343_v30 }
  0x69   :  { %2938 = vmatmul.mubr.f32.vlgmr.msra.gmra.mrb[0].mxu0 %v179_v11  ;;  %v710_v29 = vand.u32 4294901760, %v4345_v31  ;;  %v717_v39 = vand.u32 4294901760, %v4347_v38  ;;  %v724_v40 = vand.u32 4294901760, %v4351_v43  ;;  %v731_v54 = vand.u32 4294901760, %v4354_v45 }
  0x6a   :  { %3594 = vmatpush3.bf16.msra.mxu0 %v3578_v15  ;;  %2944 = vmatprep.mubr.msk.f32.mxu0 %vm4203_vm0, %v4204_v1  ;;  %v4423_v15 = vsub.f32 %v584_v3, %v632_v5  ;;  %v691_v26 = vand.u32 4294901760, %v690_v24  ;;  %v704_v34 = vsub.f32 %v4343_v30, %v703_v28  ;;  %v738_v55 = vand.u32 4294901760, %v4356_v46 }
  0x6b   :  { %3595 = vmatprep.subr.bf16.mxu0 %v5242_v0  ;;  %v4445_v33 = vpack.c.bf16 %v710_v29, %v703_v28  ;;  %v711_v35 = vsub.f32 %v4345_v31, %v710_v29  ;;  %v4453_v42 = vpack.c.bf16 %v724_v40, %v717_v39  ;;  %v718_v44 = vsub.f32 %v4347_v38, %v717_v39 }
  0x6c   :  { %v705_v36 = vand.u32 4294901760, %v704_v34  ;;  %v725_v47 = vsub.f32 %v4351_v43, %v724_v40  ;;  %v4461_v58 = vpack.c.bf16 %v738_v55, %v731_v54  ;;  %v732_v59 = vsub.f32 %v4354_v45, %v731_v54 }
  0x6d   :  { %2917 = vmatmul.mubr.f32.vlgmr.msra.gmra.mrb[0].mxu1 %v179_v11  ;;  %v712_v37 = vand.u32 4294901760, %v711_v35  ;;  %v739_v62 = vsub.f32 %v4356_v46, %v738_v55  ;;  %v745_v4 = vand.u32 4294901760, %v4397_v60  ;;  %v752_v5 = vand.u32 4294901760, %v4399_v61 }
  0x6e   :  { %3585 = vmatpush3.bf16.msra.mxu1 %v3584_v48  ;;  %2923 = vmatprep.mubr.msk.f32.mxu1 %vm4203_vm0, %v4204_v1  ;;  %v719_v48 = vand.u32 4294901760, %v718_v44  ;;  %v726_v53 = vand.u32 4294901760, %v725_v47  ;;  %v733_v63 = vand.u32 4294901760, %v732_v59  ;;  %v766_v24 = vand.u32 4294901760, %v4421_v14 }
  0x6f   :  { %3667 = vmatprep.subr.bf16.mxu1 %v5242_v0  ;;  %v4451_v41 = vpack.c.bf16 %v712_v37, %v705_v36  ;;  %v740_v3 = vand.u32 4294901760, %v739_v62  ;;  %v4469_v8 = vpack.c.bf16 %v752_v5, %v745_v4  ;;  %v773_v35 = vand.u32 4294901760, %v4423_v15 }
  0x70   :  { %v4459_v56 = vpack.c.bf16 %v726_v53, %v719_v48  ;;  %v767_v28 = vsub.f32 %v4421_v14, %v766_v24  ;;  %v780_v36 = vand.u32 4294901760, %v4425_v16  ;;  %v787_v53 = vand.u32 4294901760, %v4428_v17 }
  0x71   :  { %2945 = vmatmul.mubr.f32.vlgmr.msra.gmra.mrb[0].mxu0 %v179_v11  ;;  %v641_v11 = vand.u32 4294901760, %v587_v9  ;;  %v4467_v6 = vpack.c.bf16 %v740_v3, %v733_v63  ;;  %v774_v40 = vsub.f32 %v4423_v15, %v773_v35 }
  0x72   :  { %3597 = vmatpush3.bf16.msra.mxu0 %v4367_v49  ;;  %2979 = vmatprep.mubr.msk.f32.mxu0 %vm4203_vm0, %v4204_v1  ;;  %v768_v34 = vand.u32 4294901760, %v767_v28  ;;  %v4485_v39 = vpack.c.bf16 %v780_v36, %v773_v35  ;;  %v781_v44 = vsub.f32 %v4425_v16, %v780_v36  ;;  %v788_v62 = vsub.f32 %v4428_v17, %v787_v53 }
  0x73   :  { %3598 = vmatprep.subr.bf16.mxu0 %v5242_v0  ;;  %v4417_v12 = vpack.c.bf16 %v641_v11, %v638_v10  ;;  %v4430_v18 = vsub.f32 %v587_v9, %v641_v11  ;;  %v746_v9 = vsub.f32 %v4397_v60, %v745_v4  ;;  %v753_v10 = vsub.f32 %v4399_v61, %v752_v5 }
  0x74   :  { %v775_v47 = vand.u32 4294901760, %v774_v40  ;;  %v782_v48 = vand.u32 4294901760, %v781_v44  ;;  %v789_v3 = vand.u32 4294901760, %v788_v62  ;;  %v4521_v40 = vld [vmem:[#allocation7 + $0x10] sm:$0xff]  ;;  %v4523_v44 = vld [vmem:[#allocation7 + $0x18] sm:$0xff] }
  0x75   :  { %2924 = vmatmul.mubr.f32.vlgmr.msra.gmra.mrb[0].mxu1 %v180_v20  ;;  %v696_v20 = vand.u32 4294901760, %v4338_v22  ;;  %v747_v11 = vand.u32 4294901760, %v746_v9  ;;  %v794_v54 = vand.u32 4294901760, %v4430_v18 }
  0x76   :  { %3669 = vmatpush3.bf16.msra.mxu1 %v4367_v49  ;;  %3600 = vmatpush3.bf16.msra.mxu0 %v4373_v50  ;;  %v4491_v55 = vpack.c.bf16 %v782_v48, %v775_v47 }
  0x77   :  { %3670 = vmatprep.subr.bf16.mxu1 %v5242_v0  ;;  %3601 = vmatprep.subr.bf16.mxu0 %v5242_v0  ;;  %v4437_v23 = vpack.c.bf16 %v696_v20, %v689_v19  ;;  %v697_v25 = vsub.f32 %v4338_v22, %v696_v20  ;;  %v754_v19 = vand.u32 4294901760, %v753_v10  ;;  %v759_v20 = vand.u32 4294901760, %v4419_v13 }
  0x78   :  { %3084 = vmatprep.mubr.msk.f32.mxu1 %vm4203_vm0, %v4204_v1  ;;  %v4493_v59 = vpack.c.bf16 %v794_v54, %v787_v53  ;;  %v795_v63 = vsub.f32 %v4430_v18, %v794_v54  ;;  %v5239_v53 = vand.u32 4294901760, %v4521_v40  ;;  %v5240_v54 = vand.u32 4294901760, %v4523_v44 }
  0x79   :  { %v698_v27 = vand.u32 4294901760, %v697_v25  ;;  %v4475_v25 = vpack.c.bf16 %v754_v19, %v747_v11 }
  0x7a   :  { %3672 = vmatpush3.bf16.msra.mxu1 %v4373_v50  ;;  %3603 = vmatpush3.bf16.msra.mxu0 %v4379_v51  ;;  %v796_v4 = vand.u32 4294901760, %v795_v63  ;;  %v4540_v62 = vsub.f32 %v4521_v40, %v5239_v53  ;;  %v4545_v63 = vsub.f32 %v4523_v44, %v5240_v54 }
  0x7b   :  { %3673 = vmatprep.subr.bf16.mxu1 %v5242_v0  ;;  %3604 = vmatprep.subr.bf16.mxu0 %v5242_v0  ;;  %v4443_v32 = vpack.c.bf16 %v698_v27, %v691_v26  ;;  %v4477_v26 = vpack.c.bf16 %v766_v24, %v759_v20  ;;  %v760_v27 = vsub.f32 %v4419_v13, %v759_v20  ;;  %v2577_v24 = vld [vmem:[%s5229_s2] ss:$0 sm:$0xff] }
  0x7c   :  { %v4497_v5 = vpack.c.bf16 %v796_v4, %v789_v3  ;;  %v4547_v3 = vld [vmem:[#allocation7 + $0x20] sm:$0xff]  ;;  %v4549_v4 = vld [vmem:[#allocation7 + $0x28] sm:$0xff] }
  0x7d   :  { %v761_v29 = vand.u32 4294901760, %v760_v27 }
  0x7e   :  { %3675 = vmatpush3.bf16.msra.mxu1 %v4379_v51  ;;  %3606 = vmatpush3.bf16.msra.mxu0 %v4387_v52 }
  0x7f   :  { %3676 = vmatprep.subr.bf16.mxu1 %v5242_v0  ;;  %3607 = vmatprep.subr.bf16.mxu0 %v5242_v0  ;;  %v4483_v37 = vpack.c.bf16 %v768_v34, %v761_v29  ;;  %v4515_v29 = vld [vmem:[#allocation7] sm:$0xff]  ;;  %v4517_v34 = vld [vmem:[#allocation7 + $0x8] sm:$0xff] }
  0x80   :  { %v5238_v35 = vand.u32 4294901760, %v4515_v29  ;;  %v5237_v36 = vand.u32 4294901760, %v4517_v34 }
  0x82   :  { %3678 = vmatpush3.bf16.msra.mxu1 %v4387_v52  ;;  %3609 = vmatpush3.bf16.msra.mxu0 %v4395_v57  ;;  %v4528_v47 = vsub.f32 %v4515_v29, %v5238_v35  ;;  %v4533_v48 = vsub.f32 %v4517_v34, %v5237_v36  ;;  %v5241_v36 = vand.u32 4294901760, %v4547_v3  ;;  %v5244_v35 = vand.u32 4294901760, %v4549_v4 }
  0x83   :  { %3679 = vmatprep.subr.bf16.mxu1 %v5242_v0  ;;  %3610 = vmatprep.subr.bf16.mxu0 %v5242_v0 }
  0x84   :  { %v4556_v28 = vsub.f32 %v4547_v3, %v5241_v36  ;;  %v4561_v53 = vsub.f32 %v4549_v4, %v5244_v35 }
  0x86   :  { %3681 = vmatpush3.bf16.msra.mxu1 %v4395_v57  ;;  %3612 = vmatpush3.bf16.msra.mxu0 %v4405_v2 }
  0x87   :  { %3682 = vmatprep.subr.bf16.mxu1 %v5242_v0  ;;  %3613 = vmatprep.subr.bf16.mxu0 %v5242_v0 }
  0x8a   :  { %3684 = vmatpush3.bf16.msra.mxu1 %v4405_v2  ;;  %3615 = vmatpush3.bf16.msra.mxu0 %v4411_v7 }
  0x8b   :  { %3685 = vmatprep.subr.bf16.mxu1 %v5242_v0  ;;  %3616 = vmatprep.subr.bf16.mxu0 %v5242_v0 }
  0x8e   :  { %3687 = vmatpush3.bf16.msra.mxu1 %v4411_v7  ;;  %3618 = vmatpush3.bf16.msra.mxu0 %v4417_v12 }
  0x8f   :  { %3688 = vmatprep.subr.bf16.mxu1 %v5242_v0  ;;  %3619 = vmatprep.subr.bf16.mxu0 %v5242_v0 }
  0x92   :  { %3690 = vmatpush3.bf16.msra.mxu1 %v4417_v12 }
  0x93   :  { %3691 = vmatprep.subr.bf16.mxu1 %v5242_v0 }
 0x144   :  { %v567_v54 = vpop.f32.mrb[0].mxu0 }
 0x145   :  { %v2946_v27 = vpop.f32.mrb[1].mxu0 }
 0x148   :  { %v342_v20 = vpop.f32.mrb[0].mxu1 }
 0x149   :  { %v4027_v19 = vadd.f32 %v2577_v24, %v342_v20  ;;  %v2925_v11 = vpop.f32.mrb[1].mxu1 }
 0x14a   :  { %v5262_v11 = vmov 0.0|0.0  }
 0x14b   :  { %v4028_v10 = vadd.f32 %v4027_v19, %v567_v54  ;;  %v1362_v54 = vand.u32 4294901760, %v4533_v48 }
 0x14d   :  { %v4566_v9 = vmax.f32 %v4028_v10, 0.0 }
 0x14f   :  { %v4569_v36 = vand.u32 4294901760, %v4566_v9 }
 0x151   :  { %v4573_v0 = vsub.f32 %v4566_v9, %v4569_v36 }
 0x153   :  { %v678_v35 = vand.u32 4294901760, %v4573_v0 }
 0x155   :  { %3085 = vmatmul.mubr.f32.vlgmr.msra.gmra.mrb[2].mxu1 %v678_v35  ;;  %v679_v27 = vsub.f32 %v4573_v0, %v678_v35 }
 0x156   :  { %3693 = vmatpush3.bf16.msra.mxu1 %v4437_v23  ;;  %3119 = vmatprep.mubr.msk.f32.mxu1 %vm4203_vm0, %v4204_v1  ;;  %v5263_v23 = vpack.c.bf16 %v4338_v22, %v4336_v21  ;;  %v5265_v21 = vpack.c.bf16 %v4351_v43, %v4347_v38  ;;  %v5266_v22 = vpack.c.bf16 %v4356_v46, %v4354_v45  ;;  %v5271_v45 = vand.u32 4294901760, %v4515_v29 }
 0x157   :  { %3694 = vmatprep.subr.bf16.mxu1 %v5262_v11  ;;  %v680_v10 = vand.u32 4294901760, %v679_v27  ;;  %v5269_v38 = vpack.c.bf16 %v4425_v16, %v4423_v15  ;;  %v5270_v43 = vpack.c.bf16 %v4430_v18, %v4428_v17  ;;  %v5272_v46 = vand.u32 4294901760, %v4517_v34  ;;  %v1246_v17 = vld [vmem:[#allocation7 + $0x40] sm:$0xff]  ;;  %v1247_v18 = vld [vmem:[#allocation7 + $0x48] sm:$0xff] }
 0x159   :  { %2980 = vmatmul.mubr.f32.vlgmr.msra.gmra.mrb[2].mxu0 %v680_v10 }
 0x15a   :  { %3621 = vmatpush3.bf16.msra.mxu0 %v4443_v32  ;;  %3696 = vmatpush3.bf16.msra.mxu1 %v4445_v33  ;;  %v1286_v32 = vand.u32 4294901760, %v1246_v17  ;;  %v1289_v33 = vand.u32 4294901760, %v1247_v18 }
 0x15b   :  { %3622 = vmatprep.subr.bf16.mxu0 %v5262_v11  ;;  %3697 = vmatprep.subr.bf16.mxu1 %v5262_v11 }
 0x15c   :  { %3014 = vmatprep.mubr.msk.f32.mxu0 %vm4203_vm0, %v4204_v1  ;;  %v4715_v19 = vsub.f32 %v1246_v17, %v1286_v32  ;;  %v4717_v20 = vsub.f32 %v1247_v18, %v1289_v33 }
 0x15e   :  { %3624 = vmatpush3.bf16.msra.mxu0 %v4451_v41  ;;  %3699 = vmatpush3.bf16.msra.mxu1 %v4453_v42  ;;  %v4705_v41 = vpack.c.bf16 %v1289_v33, %v1286_v32  ;;  %v1248_v42 = vld [vmem:[#allocation7 + $0x50] sm:$0xff] }
 0x15f   :  { %3625 = vmatprep.subr.bf16.mxu0 %v5262_v11  ;;  %3700 = vmatprep.subr.bf16.mxu1 %v5262_v11 }
 0x162   :  { %3627 = vmatpush3.bf16.msra.mxu0 %v4459_v56  ;;  %3702 = vmatpush3.bf16.msra.mxu1 %v4461_v58  ;;  %v1249_v56 = vld [vmem:[#allocation7 + $0x58] sm:$0xff]  ;;  %v1292_v58 = vand.u32 4294901760, %v1248_v42 }
 0x163   :  { %3628 = vmatprep.subr.bf16.mxu0 %v5262_v11  ;;  %3703 = vmatprep.subr.bf16.mxu1 %v5262_v11 }
 0x164   :  { %v4719_v24 = vsub.f32 %v1248_v42, %v1292_v58 }
 0x166   :  { %3630 = vmatpush3.bf16.msra.mxu0 %v4467_v6  ;;  %3705 = vmatpush3.bf16.msra.mxu1 %v4469_v8  ;;  %v1295_v6 = vand.u32 4294901760, %v1249_v56 }
 0x167   :  { %3631 = vmatprep.subr.bf16.mxu0 %v5262_v11  ;;  %3706 = vmatprep.subr.bf16.mxu1 %v5262_v11 }
 0x168   :  { %v4709_v8 = vpack.c.bf16 %v1295_v6, %v1292_v58  ;;  %v4721_v29 = vsub.f32 %v1249_v56, %v1295_v6  ;;  %v5252_v58 = vand.u32 4294901760, %v4715_v19  ;;  %v5251_v6 = vand.u32 4294901760, %v4717_v20 }
 0x16a   :  { %3633 = vmatpush3.bf16.msra.mxu0 %v4475_v25  ;;  %3708 = vmatpush3.bf16.msra.mxu1 %v4477_v26  ;;  %v1250_v25 = vld [vmem:[#allocation7 + $0x60] sm:$0xff]  ;;  %v1251_v26 = vld [vmem:[#allocation7 + $0x68] sm:$0xff] }
 0x16b   :  { %3634 = vmatprep.subr.bf16.mxu0 %v5262_v11  ;;  %3709 = vmatprep.subr.bf16.mxu1 %v5262_v11 }
 0x16e   :  { %3636 = vmatpush3.bf16.msra.mxu0 %v4483_v37  ;;  %3711 = vmatpush3.bf16.msra.mxu1 %v4485_v39  ;;  %v1298_v37 = vand.u32 4294901760, %v1250_v25  ;;  %v1301_v39 = vand.u32 4294901760, %v1251_v26 }
 0x16f   :  { %3637 = vmatprep.subr.bf16.mxu0 %v5262_v11  ;;  %3712 = vmatprep.subr.bf16.mxu1 %v5262_v11 }
 0x170   :  { %v4724_v34 = vsub.f32 %v1250_v25, %v1298_v37  ;;  %v4726_v35 = vsub.f32 %v1251_v26, %v1301_v39  ;;  %v1412_v26 = vsub.f32 %v4715_v19, %v5252_v58 }
 0x172   :  { %3639 = vmatpush3.bf16.msra.mxu0 %v4491_v55  ;;  %3714 = vmatpush3.bf16.msra.mxu1 %v4493_v59  ;;  %v4713_v55 = vpack.c.bf16 %v1301_v39, %v1298_v37  ;;  %v1252_v59 = vld [vmem:[#allocation7 + $0x70] sm:$0xff]  ;;  %v1419_v37 = vsub.f32 %v4717_v20, %v5251_v6  ;;  %v1413_v39 = vand.u32 4294901760, %v1412_v26 }
 0x173   :  { %3640 = vmatprep.subr.bf16.mxu0 %v5262_v11  ;;  %3715 = vmatprep.subr.bf16.mxu1 %v5262_v11 }
 0x175   :  { %3120 = vmatmul.mubr.f32.vlgmr.msra.gmra.mrb[2].mxu1 %v4569_v36 }
 0x176   :  { %3642 = vmatpush3.bf16.msra.mxu0 %v4497_v5  ;;  %3717 = vmatpush3.bf16.msra.mxu1 %v4367_v49  ;;  %v5264_v49 = vpack.c.bf16 %v4345_v31, %v4343_v30  ;;  %v5267_v30 = vpack.c.bf16 %v4399_v61, %v4397_v60  ;;  %v5268_v31 = vpack.c.bf16 %v4421_v14, %v4419_v13  ;;  %v5275_v60 = vand.u32 4294901760, %v4547_v3  ;;  %v1253_v5 = vld [vmem:[#allocation7 + $0x78] sm:$0xff] }
 0x177   :  { %3643 = vmatprep.subr.bf16.mxu0 %v5262_v11  ;;  %3718 = vmatprep.subr.bf16.mxu1 %v5262_v11  ;;  %v5276_v61 = vand.u32 4294901760, %v4549_v4 }
 0x178   :  { %3154 = vmatprep.mubr.msk.f32.mxu1 %vm4203_vm0, %v4204_v1 }
 0x179   :  { %3015 = vmatmul.mubr.f32.vlgmr.msra.gmra.mrb[2].mxu0 %v4569_v36 }
 0x17a   :  { %3645 = vmatpush3.bf16.msra.mxu0 %v5263_v23  ;;  %3720 = vmatpush3.bf16.msra.mxu1 %v4373_v50  ;;  %v4671_v50 = vpack.c.bf16 %v5272_v46, %v5271_v45  ;;  %v1363_v23 = vsub.f32 %v4533_v48, %v1362_v54 }
 0x17b   :  { %3646 = vmatprep.subr.bf16.mxu0 %v5262_v11  ;;  %3721 = vmatprep.subr.bf16.mxu1 %v5262_v11 }
 0x17c   :  { %3049 = vmatprep.mubr.msk.f32.mxu0 %vm4203_vm0, %v4204_v1 }
 0x17e   :  { %3648 = vmatpush3.bf16.msra.mxu0 %v5264_v49  ;;  %3723 = vmatpush3.bf16.msra.mxu1 %v4379_v51  ;;  %v5273_v51 = vand.u32 4294901760, %v4521_v40  ;;  %v1307_v40 = vand.u32 4294901760, %v1253_v5  ;;  %v1369_v49 = vand.u32 4294901760, %v4540_v62 }
 0x17f   :  { %3649 = vmatprep.subr.bf16.mxu0 %v5262_v11  ;;  %3724 = vmatprep.subr.bf16.mxu1 %v5262_v11 }
 0x180   :  { %v4735_v27 = vsub.f32 %v1253_v5, %v1307_v40  ;;  %v5250_v5 = vand.u32 4294901760, %v4719_v24 }
 0x182   :  { %3651 = vmatpush3.bf16.msra.mxu0 %v5265_v21  ;;  %3726 = vmatpush3.bf16.msra.mxu1 %v4387_v52  ;;  %v5274_v52 = vand.u32 4294901760, %v4523_v44  ;;  %v1355_v44 = vand.u32 4294901760, %v4528_v47  ;;  %v1376_v21 = vand.u32 4294901760, %v4545_v63 }
 0x183   :  { %3652 = vmatprep.subr.bf16.mxu0 %v5262_v11  ;;  %3727 = vmatprep.subr.bf16.mxu1 %v5262_v11 }
 0x184   :  { %v1356_v10 = vsub.f32 %v4528_v47, %v1355_v44 }
 0x186   :  { %3654 = vmatpush3.bf16.msra.mxu0 %v5266_v22  ;;  %3729 = vmatpush3.bf16.msra.mxu1 %v4395_v57  ;;  %v4682_v57 = vpack.c.bf16 %v5274_v52, %v5273_v51  ;;  %v1357_v22 = vand.u32 4294901760, %v1356_v10  ;;  %v1383_v51 = vand.u32 4294901760, %v4556_v28  ;;  %v5255_v52 = vand.u32 4294901760, %v4561_v53 }
 0x187   :  { %3655 = vmatprep.subr.bf16.mxu0 %v5262_v11  ;;  %3730 = vmatprep.subr.bf16.mxu1 %v5262_v11  ;;  %v1426_v10 = vsub.f32 %v4719_v24, %v5250_v5 }
 0x18a   :  { %3657 = vmatpush3.bf16.msra.mxu0 %v5267_v30  ;;  %3732 = vmatpush3.bf16.msra.mxu1 %v4405_v2  ;;  %v1244_v2 = vld [vmem:[#allocation7 + $0x30] sm:$0xff]  ;;  %v1364_v30 = vand.u32 4294901760, %v1363_v23 }
 0x18b   :  { %3658 = vmatprep.subr.bf16.mxu0 %v5262_v11  ;;  %3733 = vmatprep.subr.bf16.mxu1 %v5262_v11 }
 0x18e   :  { %3660 = vmatpush3.bf16.msra.mxu0 %v5268_v31  ;;  %3735 = vmatpush3.bf16.msra.mxu1 %v4411_v7  ;;  %v1245_v7 = vld [vmem:[#allocation7 + $0x38] sm:$0xff]  ;;  %v1370_v31 = vsub.f32 %v4540_v62, %v1369_v49 }
 0x18f   :  { %3661 = vmatprep.subr.bf16.mxu0 %v5262_v11  ;;  %3736 = vmatprep.subr.bf16.mxu1 %v5262_v11  ;;  %v1283_v13 = vand.u32 4294901760, %v1245_v7 }
 0x190   :  { %v1371_v45 = vand.u32 4294901760, %v1370_v31  ;;  %v5248_v31 = vand.u32 4294901760, %v4724_v34 }
 0x191   :  { %v4701_v16 = vsub.f32 %v1245_v7, %v1283_v13 }
 0x192   :  { %3663 = vmatpush3.bf16.msra.mxu0 %v5269_v38  ;;  %3738 = vmatpush3.bf16.msra.mxu1 %v4417_v12  ;;  %v1280_v12 = vand.u32 4294901760, %v1244_v2  ;;  %v1377_v38 = vsub.f32 %v4545_v63, %v1376_v21 }
 0x193   :  { %3664 = vmatprep.subr.bf16.mxu0 %v5262_v11  ;;  %3883 = vmatprep.subr.bf16.mxu1 %v5262_v11  ;;  %v5253_v17 = vand.u32 4294901760, %v4701_v16 }
 0x194   :  { %v4697_v14 = vpack.c.bf16 %v1283_v13, %v1280_v12  ;;  %v4699_v15 = vsub.f32 %v1244_v2, %v1280_v12  ;;  %v1378_v46 = vand.u32 4294901760, %v1377_v38  ;;  %v1391_v2 = vsub.f32 %v4561_v53, %v5255_v52 }
 0x195   :  { %3155 = vmatmul.mubr.f32.vlgmr.msra.gmra.mrb[2].mxu1 %v4569_v36  ;;  %v1304_v36 = vand.u32 4294901760, %v1252_v59  ;;  %v1405_v33 = vsub.f32 %v4701_v16, %v5253_v17  ;;  %v5247_v38 = vand.u32 4294901760, %v4726_v35 }
 0x196   :  { %3666 = vmatpush3.bf16.msra.mxu0 %v5270_v43  ;;  %3399 = vmatprep.mubr.msk.f32.mxu1 %vm4203_vm0, %v4204_v1  ;;  %v4753_v43 = vpack.c.bf16 %v1364_v30, %v1357_v22  ;;  %v1392_v12 = vand.u32 4294901760, %v1391_v2  ;;  %v5254_v13 = vand.u32 4294901760, %v4699_v15  ;;  %v1427_v22 = vand.u32 4294901760, %v1426_v10 }
 0x197   :  { %3739 = vmatprep.subr.bf16.mxu0 %v5262_v11  ;;  %v4731_v3 = vpack.c.bf16 %v1307_v40, %v1304_v36  ;;  %v4733_v4 = vsub.f32 %v1252_v59, %v1304_v36  ;;  %v1406_v56 = vand.u32 4294901760, %v1405_v33  ;;  %v1420_v59 = vand.u32 4294901760, %v1419_v37 }
 0x198   :  { %v1398_v32 = vsub.f32 %v4699_v15, %v5254_v13  ;;  %v5249_v36 = vand.u32 4294901760, %v4721_v29  ;;  %v3791_v10 = vpack.c.bf16 %v4545_v63, %v4540_v62  ;;  %v5279_v62 = vand.u32 4294901760, %v4701_v16 }
 0x199   :  { %3050 = vmatmul.mubr.f32.vlgmr.msra.gmra.mrb[2].mxu0 %v4573_v0  ;;  %v4692_v0 = vpack.c.bf16 %v5276_v61, %v5275_v60  ;;  %v4757_v60 = vpack.c.bf16 %v1378_v46, %v1371_v45  ;;  %v1384_v61 = vsub.f32 %v4556_v28, %v1383_v51  ;;  %v3776_v40 = vpack.c.bf16 %v1420_v59, %v1413_v39 }
 0x19a   :  { %3741 = vmatpush3.bf16.msra.mxu0 %v4671_v50  ;;  %3189 = vmatprep.mubr.msk.f32.mxu0 %vm4203_vm0, %v4204_v1  ;;  %v1399_v42 = vand.u32 4294901760, %v1398_v32  ;;  %v1433_v23 = vsub.f32 %v4721_v29, %v5249_v36  ;;  %v1440_v46 = vsub.f32 %v4724_v34, %v5248_v31  ;;  %v5245_v32 = vand.u32 4294901760, %v4735_v27 }
 0x19b   :  { %3742 = vmatprep.subr.bf16.mxu0 %v5262_v11  ;;  %v1385_v7 = vand.u32 4294901760, %v1384_v61  ;;  %v1447_v61 = vsub.f32 %v4726_v35, %v5247_v38  ;;  %v3788_v59 = vpack.c.bf16 %v4533_v48, %v4528_v47  ;;  %v5277_v47 = vand.u32 4294901760, %v4561_v53 }
 0x19c   :  { %v3773_v25 = vpack.c.bf16 %v1406_v56, %v1399_v42  ;;  %v1434_v30 = vand.u32 4294901760, %v1433_v23  ;;  %v1441_v2 = vand.u32 4294901760, %v1440_v46  ;;  %v1461_v56 = vsub.f32 %v4735_v27, %v5245_v32 }
 0x19d   :  { %v3770_v18 = vpack.c.bf16 %v1392_v12, %v1385_v7  ;;  %v1448_v7 = vand.u32 4294901760, %v1447_v61  ;;  %v5246_v12 = vand.u32 4294901760, %v4733_v4  ;;  %v3794_v23 = vpack.c.bf16 %v4561_v53, %v4556_v28 }
 0x19e   :  { %3744 = vmatpush3.bf16.msra.mxu0 %v4682_v57  ;;  %v3779_v45 = vpack.c.bf16 %v1434_v30, %v1427_v22  ;;  %v1462_v37 = vand.u32 4294901760, %v1461_v56  ;;  %v3797_v22 = vpack.c.bf16 %v4701_v16, %v4699_v15  ;;  %v3800_v30 = vpack.c.bf16 %v4717_v20, %v4715_v19  ;;  %v2578_v56 = vld [vmem:[%s5231_s4] ss:$0 sm:$0xff] }
 0x19f   :  { %3745 = vmatprep.subr.bf16.mxu0 %v5262_v11  ;;  %v3782_v33 = vpack.c.bf16 %v1448_v7, %v1441_v2  ;;  %v1454_v42 = vsub.f32 %v4733_v4, %v5246_v12  ;;  %v3803_v46 = vpack.c.bf16 %v4721_v29, %v4719_v24  ;;  %v3806_v61 = vpack.c.bf16 %v4726_v35, %v4724_v34 }
 0x1a0   :  { %v3809_v2 = vpack.c.bf16 %v4735_v27, %v4733_v4  ;;  %v3842_v48 = vpack.c.bf16 %v5277_v47, %v1383_v51  ;;  %v5282_v28 = vand.u32 4294901760, %v4719_v24  ;;  %v5283_v53 = vand.u32 4294901760, %v4721_v29  ;;  %v1915_v29 = vld [vmem:[#allocation9 + $0x58] sm:$0xff] }
 0x1a1   :  { %v1455_v26 = vand.u32 4294901760, %v1454_v42  ;;  %v5285_v16 = vand.u32 4294901760, %v4726_v35  ;;  %v1916_v35 = vld [vmem:[#allocation9 + $0x60] sm:$0xff] }
 0x1a2   :  { %3747 = vmatpush3.bf16.msra.mxu0 %v4692_v0  ;;  %v3851_v51 = vpack.c.bf16 %v5283_v53, %v5282_v28 }
 0x1a3   :  { %3748 = vmatprep.subr.bf16.mxu0 %v5262_v11  ;;  %v3785_v39 = vpack.c.bf16 %v1462_v37, %v1455_v26 }
 0x1a6   :  { %3750 = vmatpush3.bf16.msra.mxu0 %v4697_v14 }
 0x1a7   :  { %3751 = vmatprep.subr.bf16.mxu0 %v5262_v11 }
 0x1aa   :  { %3753 = vmatpush3.bf16.msra.mxu0 %v4705_v41 }
 0x1ab   :  { %3754 = vmatprep.subr.bf16.mxu0 %v5262_v11 }
 0x1ae   :  { %3756 = vmatpush3.bf16.msra.mxu0 %v4709_v8 }
 0x1af   :  { %3757 = vmatprep.subr.bf16.mxu0 %v5262_v11 }
 0x1b2   :  { %3759 = vmatpush3.bf16.msra.mxu0 %v4713_v55 }
 0x1b3   :  { %3760 = vmatprep.subr.bf16.mxu0 %v5262_v11 }
 0x1b6   :  { %3762 = vmatpush3.bf16.msra.mxu0 %v4731_v3 }
 0x1b7   :  { %3763 = vmatprep.subr.bf16.mxu0 %v5262_v11 }
 0x268   :  { %v1232_v7 = vpop.f32.mrb[2].mxu1 }
 0x269   :  { %v3156_v42 = vpop.f32.mrb[3].mxu1 }
 0x26c   :  { %v937_v26 = vpop.f32.mrb[2].mxu0 }
 0x26d   :  { %v4029_v37 = vadd.f32 %v2578_v56, %v937_v26  ;;  %v3051_v32 = vpop.f32.mrb[3].mxu0 }
 0x26f   :  { %v4030_v12 = vadd.f32 %v4029_v37, %v1232_v7  ;;  %v1911_v7 = vld [vmem:[#allocation9 + $0x38] sm:$0xff] }
 0x271   :  { %v1236_v38 = vmax.f32 %v4030_v12, 0.0 }
 0x273   :  { %v4825_v31 = vadd.f32 %v1236_v38, %v4566_v9  ;;  %v1904_v9 = vld [vmem:[#allocation9] sm:$0xff] }
 0x274   :  { %v1908_v38 = vld [vmem:[#allocation9 + $0x20] sm:$0xff] }
 0x275   :  { %v4828_v36 = vand.u32 4294901760, %v4825_v31  ;;  %v1940_v32 = vand.u32 4294901760, %v1908_v38 }
 0x277   :  { %v4832_v5 = vsub.f32 %v4825_v31, %v4828_v36  ;;  %v4864_v17 = vsub.f32 %v1908_v38, %v1940_v32 }
 0x279   :  { %v1344_v42 = vand.u32 4294901760, %v4832_v5  ;;  %v2049_v53 = vand.u32 4294901760, %v4864_v17 }
 0x27b   :  { %v1345_v6 = vsub.f32 %v4832_v5, %v1344_v42 }
 0x27d   :  { %v1346_v56 = vand.u32 4294901760, %v1345_v6 }
 0x27f   :  { %3190 = vmatmul.mubr.f32.vlgmr.msra.gmra.mrb[4].mxu0 %v1346_v56 }
 0x280   :  { %3765 = vmatpush3.bf16.msra.mxu0 %v4753_v43  ;;  %3224 = vmatprep.mubr.msk.f32.mxu0 %vm4203_vm0, %v4204_v1  ;;  %v1905_v43 = vld [vmem:[#allocation9 + $0x8] sm:$0xff] }
 0x281   :  { %3766 = vmatprep.subr.bf16.mxu0 %v5262_v11  ;;  %v1931_v6 = vand.u32 4294901760, %v1905_v43 }
 0x284   :  { %3768 = vmatpush3.bf16.msra.mxu0 %v4757_v60  ;;  %v1906_v60 = vld [vmem:[#allocation9 + $0x10] sm:$0xff] }
 0x285   :  { %3769 = vmatprep.subr.bf16.mxu0 %v5262_v11 }
 0x288   :  { %3771 = vmatpush3.bf16.msra.mxu0 %v3770_v18  ;;  %v1928_v18 = vand.u32 4294901760, %v1904_v9 }
 0x289   :  { %3772 = vmatprep.subr.bf16.mxu0 %v5262_v11 }
 0x28a   :  { %v4854_v26 = vpack.c.bf16 %v1931_v6, %v1928_v18  ;;  %v4856_v37 = vsub.f32 %v1904_v9, %v1928_v18  ;;  %v1949_v18 = vand.u32 4294901760, %v1911_v7 }
 0x28c   :  { %3774 = vmatpush3.bf16.msra.mxu0 %v3773_v25  ;;  %v1907_v25 = vld [vmem:[#allocation9 + $0x18] sm:$0xff]  ;;  %3885 = vmatpush3.bf16.msra.mxu1 %v4854_v26 }
 0x28d   :  { %3775 = vmatprep.subr.bf16.mxu0 %v5262_v11  ;;  %v1937_v12 = vand.u32 4294901760, %v1907_v25  ;;  %3886 = vmatprep.subr.bf16.mxu1 %v5262_v11 }
 0x28f   :  { %v4862_v58 = vsub.f32 %v1907_v25, %v1937_v12  ;;  %v2021_v25 = vand.u32 4294901760, %v4856_v37 }
 0x290   :  { %3777 = vmatpush3.bf16.msra.mxu0 %v3776_v40  ;;  %v1934_v40 = vand.u32 4294901760, %v1906_v60 }
 0x291   :  { %3778 = vmatprep.subr.bf16.mxu0 %v5262_v11 }
 0x292   :  { %v4860_v56 = vsub.f32 %v1906_v60, %v1934_v40  ;;  %v4870_v13 = vpack.c.bf16 %v1937_v12, %v1934_v40  ;;  %v4878_v60 = vsub.f32 %v1911_v7, %v1949_v18 }
 0x294   :  { %3780 = vmatpush3.bf16.msra.mxu0 %v3779_v45  ;;  %v1909_v45 = vld [vmem:[#allocation9 + $0x28] sm:$0xff]  ;;  %3888 = vmatpush3.bf16.msra.mxu1 %v4870_v13  ;;  %v2035_v47 = vand.u32 4294901760, %v4860_v56 }
 0x295   :  { %3781 = vmatprep.subr.bf16.mxu0 %v5262_v11  ;;  %3889 = vmatprep.subr.bf16.mxu1 %v5262_v11 }
 0x298   :  { %3783 = vmatpush3.bf16.msra.mxu0 %v3782_v33  ;;  %v1943_v33 = vand.u32 4294901760, %v1909_v45 }
 0x299   :  { %3784 = vmatprep.subr.bf16.mxu0 %v5262_v11 }
 0x29a   :  { %v4872_v52 = vsub.f32 %v1909_v45, %v1943_v33 }
 0x29c   :  { %3786 = vmatpush3.bf16.msra.mxu0 %v3785_v39  ;;  %v1910_v39 = vld [vmem:[#allocation9 + $0x30] sm:$0xff] }
 0x29d   :  { %3787 = vmatprep.subr.bf16.mxu0 %v5262_v11  ;;  %v1946_v9 = vand.u32 4294901760, %v1910_v39 }
 0x29f   :  { %3225 = vmatmul.mubr.f32.vlgmr.msra.gmra.mrb[4].mxu0 %v4828_v36 }
 0x2a0   :  { %3789 = vmatpush3.bf16.msra.mxu0 %v3788_v59  ;;  %3259 = vmatprep.mubr.msk.f32.mxu0 %vm4203_vm0, %v4204_v1  ;;  %v4858_v59 = vsub.f32 %v1905_v43, %v1931_v6  ;;  %v4876_v43 = vsub.f32 %v1910_v39, %v1946_v9  ;;  %v4892_v6 = vpack.c.bf16 %v1949_v18, %v1946_v9 }
 0x2a1   :  { %3790 = vmatprep.subr.bf16.mxu0 %v5262_v11 }
 0x2a2   :  { %v2028_v40 = vand.u32 4294901760, %v4858_v59 }
 0x2a4   :  { %3792 = vmatpush3.bf16.msra.mxu0 %v3791_v10  ;;  %v4884_v10 = vpack.c.bf16 %v1943_v33, %v1940_v32 }
 0x2a5   :  { %3793 = vmatprep.subr.bf16.mxu0 %v5262_v11 }
 0x2a6   :  { %3891 = vmatpush3.bf16.msra.mxu1 %v4884_v10 }
 0x2a7   :  { %3892 = vmatprep.subr.bf16.mxu1 %v5262_v11 }
 0x2a8   :  { %3795 = vmatpush3.bf16.msra.mxu0 %v3794_v23  ;;  %v3836_v23 = vpack.c.bf16 %v1362_v54, %v1355_v44  ;;  %v5278_v44 = vand.u32 4294901760, %v4699_v15  ;;  %v5280_v54 = vand.u32 4294901760, %v4715_v19  ;;  %v5284_v15 = vand.u32 4294901760, %v4724_v34 }
 0x2a9   :  { %3796 = vmatprep.subr.bf16.mxu0 %v5262_v11  ;;  %v5286_v19 = vand.u32 4294901760, %v4733_v4  ;;  %v1961_v34 = vand.u32 4294901760, %v1915_v29  ;;  %v1964_v4 = vand.u32 4294901760, %v1916_v35 }
 0x2aa   :  { %3894 = vmatpush3.bf16.msra.mxu1 %v4892_v6  ;;  %v3845_v63 = vpack.c.bf16 %v5279_v62, %v5278_v44 }
 0x2ab   :  { %3895 = vmatprep.subr.bf16.mxu1 %v5262_v11  ;;  %v5016_v32 = vsub.f32 %v1915_v29, %v1961_v34  ;;  %v5018_v33 = vsub.f32 %v1916_v35, %v1964_v4 }
 0x2ac   :  { %3798 = vmatpush3.bf16.msra.mxu0 %v3797_v22  ;;  %v3839_v22 = vpack.c.bf16 %v1376_v21, %v1369_v49  ;;  %v5281_v49 = vand.u32 4294901760, %v4717_v20  ;;  %v5287_v20 = vand.u32 4294901760, %v4735_v27 }
 0x2ad   :  { %3799 = vmatprep.subr.bf16.mxu0 %v5262_v11 }
 0x2ae   :  { %v3848_v21 = vpack.c.bf16 %v5281_v49, %v5280_v54 }
 0x2b0   :  { %3801 = vmatpush3.bf16.msra.mxu0 %v3800_v30  ;;  %v3857_v30 = vpack.c.bf16 %v5287_v20, %v5286_v19 }
 0x2b1   :  { %3802 = vmatprep.subr.bf16.mxu0 %v5262_v11 }
 0x2b4   :  { %3804 = vmatpush3.bf16.msra.mxu0 %v3803_v46  ;;  %v1918_v46 = vld [vmem:[#allocation9 + $0x70] sm:$0xff] }
 0x2b5   :  { %3805 = vmatprep.subr.bf16.mxu0 %v5262_v11 }
 0x2b8   :  { %3807 = vmatpush3.bf16.msra.mxu0 %v3806_v61  ;;  %v1919_v61 = vld [vmem:[#allocation9 + $0x78] sm:$0xff] }
 0x2b9   :  { %3808 = vmatprep.subr.bf16.mxu0 %v5262_v11 }
 0x2bc   :  { %3810 = vmatpush3.bf16.msra.mxu0 %v3809_v2  ;;  %v1970_v2 = vand.u32 4294901760, %v1918_v46 }
 0x2bd   :  { %3811 = vmatprep.subr.bf16.mxu0 %v5262_v11 }
 0x2be   :  { %v5024_v9 = vsub.f32 %v1918_v46, %v1970_v2 }
 0x2bf   :  { %3260 = vmatmul.mubr.f32.vlgmr.msra.gmra.mrb[4].mxu0 %v4832_v5  ;;  %v3854_v5 = vpack.c.bf16 %v5285_v16, %v5284_v15  ;;  %v2050_v16 = vsub.f32 %v4864_v17, %v2049_v53 }
 0x2c0   :  { %3813 = vmatpush3.bf16.msra.mxu0 %v4671_v50  ;;  %3294 = vmatprep.mubr.msk.f32.mxu0 %vm4203_vm0, %v4204_v1 }
 0x2c1   :  { %3814 = vmatprep.subr.bf16.mxu0 %v5262_v11  ;;  %v2051_v19 = vand.u32 4294901760, %v2050_v16 }
 0x2c4   :  { %3816 = vmatpush3.bf16.msra.mxu0 %v4682_v57 }
 0x2c5   :  { %3817 = vmatprep.subr.bf16.mxu0 %v5262_v11 }
 0x2c8   :  { %3819 = vmatpush3.bf16.msra.mxu0 %v4692_v0 }
 0x2c9   :  { %3820 = vmatprep.subr.bf16.mxu0 %v5262_v11 }
 0x2cc   :  { %3822 = vmatpush3.bf16.msra.mxu0 %v4697_v14 }
 0x2cd   :  { %3823 = vmatprep.subr.bf16.mxu0 %v5262_v11 }
 0x2d0   :  { %3825 = vmatpush3.bf16.msra.mxu0 %v4705_v41 }
 0x2d1   :  { %3826 = vmatprep.subr.bf16.mxu0 %v5262_v11 }
 0x2d4   :  { %3828 = vmatpush3.bf16.msra.mxu0 %v4709_v8 }
 0x2d5   :  { %3829 = vmatprep.subr.bf16.mxu0 %v5262_v11 }
 0x2d8   :  { %3831 = vmatpush3.bf16.msra.mxu0 %v4713_v55 }
 0x2d9   :  { %3832 = vmatprep.subr.bf16.mxu0 %v5262_v11 }
 0x2dc   :  { %3834 = vmatpush3.bf16.msra.mxu0 %v4731_v3 }
 0x2dd   :  { %3835 = vmatprep.subr.bf16.mxu0 %v5262_v11 }
 0x2df   :  { %3295 = vmatmul.mubr.f32.vlgmr.msra.gmra.mrb[4].mxu0 %v1344_v42  ;;  %v1973_v42 = vand.u32 4294901760, %v1919_v61 }
 0x2e0   :  { %3837 = vmatpush3.bf16.msra.mxu0 %v3836_v23  ;;  %3329 = vmatprep.mubr.msk.f32.mxu0 %vm4203_vm0, %v4204_v1  ;;  %v2022_v23 = vsub.f32 %v4856_v37, %v2021_v25 }
 0x2e1   :  { %3838 = vmatprep.subr.bf16.mxu0 %v5262_v11  ;;  %v5022_v7 = vpack.c.bf16 %v1973_v42, %v1970_v2  ;;  %v5026_v18 = vsub.f32 %v1919_v61, %v1973_v42  ;;  %v5260_v2 = vand.u32 4294901760, %v5016_v32 }
 0x2e2   :  { %v2023_v44 = vand.u32 4294901760, %v2022_v23 }
 0x2e4   :  { %3840 = vmatpush3.bf16.msra.mxu0 %v3839_v22  ;;  %v2029_v22 = vsub.f32 %v4858_v59, %v2028_v40 }
 0x2e5   :  { %3841 = vmatprep.subr.bf16.mxu0 %v5262_v11 }
 0x2e6   :  { %v2030_v62 = vand.u32 4294901760, %v2029_v22  ;;  %v2099_v22 = vsub.f32 %v5016_v32, %v5260_v2 }
 0x2e8   :  { %3843 = vmatpush3.bf16.msra.mxu0 %v3842_v48  ;;  %v2042_v48 = vand.u32 4294901760, %v4862_v58  ;;  %v5044_v49 = vpack.c.bf16 %v2030_v62, %v2023_v44  ;;  %v2100_v62 = vand.u32 4294901760, %v2099_v22  ;;  %v3938_v22 = vpack.c.bf16 %v4872_v52, %v4864_v17 }
 0x2e9   :  { %3844 = vmatprep.subr.bf16.mxu0 %v5262_v11  ;;  %v5289_v17 = vand.u32 4294901760, %v5016_v32 }
 0x2ea   :  { %v2043_v54 = vsub.f32 %v4862_v58, %v2042_v48 }
 0x2ec   :  { %3846 = vmatpush3.bf16.msra.mxu0 %v3845_v63  ;;  %v2036_v63 = vsub.f32 %v4860_v56, %v2035_v47  ;;  %v2044_v28 = vand.u32 4294901760, %v2043_v54 }
 0x2ed   :  { %3847 = vmatprep.subr.bf16.mxu0 %v5262_v11 }
 0x2f0   :  { %3849 = vmatpush3.bf16.msra.mxu0 %v3848_v21  ;;  %v2037_v21 = vand.u32 4294901760, %v2036_v63  ;;  %v5259_v63 = vand.u32 4294901760, %v5018_v33 }
 0x2f1   :  { %3850 = vmatprep.subr.bf16.mxu0 %v5262_v11 }
 0x2f2   :  { %v5048_v15 = vpack.c.bf16 %v2044_v28, %v2037_v21  ;;  %v2106_v28 = vsub.f32 %v5018_v33, %v5259_v63 }
 0x2f4   :  { %3852 = vmatpush3.bf16.msra.mxu0 %v3851_v51  ;;  %v2056_v51 = vand.u32 4294901760, %v4872_v52 }
 0x2f5   :  { %3853 = vmatprep.subr.bf16.mxu0 %v5262_v11 }
 0x2f8   :  { %3855 = vmatpush3.bf16.msra.mxu0 %v3854_v5  ;;  %v2057_v5 = vsub.f32 %v4872_v52, %v2056_v51 }
 0x2f9   :  { %3856 = vmatprep.subr.bf16.mxu0 %v5262_v11 }
 0x2fa   :  { %v2058_v20 = vand.u32 4294901760, %v2057_v5  ;;  %v2107_v5 = vand.u32 4294901760, %v2106_v28 }
 0x2fc   :  { %3858 = vmatpush3.bf16.msra.mxu0 %v3857_v30  ;;  %v2063_v30 = vand.u32 4294901760, %v4876_v43 }
 0x2fd   :  { %3859 = vmatprep.subr.bf16.mxu0 %v5262_v11 }
 0x2ff   :  { %3330 = vmatmul.mubr.f32.vlgmr.msra.gmra.mrb[4].mxu0 %v4828_v36 }
 0x300   :  { %3861 = vmatpush3.bf16.msra.mxu0 %v4671_v50  ;;  %3364 = vmatprep.mubr.msk.f32.mxu0 %vm4203_vm0, %v4204_v1  ;;  %v1912_v50 = vld [vmem:[#allocation9 + $0x40] sm:$0xff] }
 0x301   :  { %3862 = vmatprep.subr.bf16.mxu0 %v5262_v11 }
 0x304   :  { %3864 = vmatpush3.bf16.msra.mxu0 %v4682_v57  ;;  %v1913_v57 = vld [vmem:[#allocation9 + $0x48] sm:$0xff] }
 0x305   :  { %3865 = vmatprep.subr.bf16.mxu0 %v5262_v11 }
 0x308   :  { %3867 = vmatpush3.bf16.msra.mxu0 %v4692_v0  ;;  %v1952_v0 = vand.u32 4294901760, %v1912_v50 }
 0x309   :  { %3868 = vmatprep.subr.bf16.mxu0 %v5262_v11 }
 0x30a   :  { %v5010_v38 = vsub.f32 %v1912_v50, %v1952_v0  ;;  %v2070_v50 = vand.u32 4294901760, %v4878_v60 }
 0x30c   :  { %3870 = vmatpush3.bf16.msra.mxu0 %v4697_v14  ;;  %v1955_v14 = vand.u32 4294901760, %v1913_v57 }
 0x30d   :  { %3871 = vmatprep.subr.bf16.mxu0 %v5262_v11 }
 0x30e   :  { %v4996_v24 = vpack.c.bf16 %v1955_v14, %v1952_v0  ;;  %v5012_v45 = vsub.f32 %v1913_v57, %v1955_v14  ;;  %v3914_v57 = vpack.c.bf16 %v2058_v20, %v2051_v19  ;;  %v2064_v0 = vsub.f32 %v4876_v43, %v2063_v30 }
 0x30f   :  { %v2071_v14 = vsub.f32 %v4878_v60, %v2070_v50  ;;  %v5257_v20 = vand.u32 4294901760, %v5024_v9 }
 0x310   :  { %3873 = vmatpush3.bf16.msra.mxu0 %v4705_v41  ;;  %v1914_v41 = vld [vmem:[#allocation9 + $0x50] sm:$0xff]  ;;  %3897 = vmatpush3.bf16.msra.mxu1 %v4996_v24 }
 0x311   :  { %3874 = vmatprep.subr.bf16.mxu0 %v5262_v11  ;;  %3898 = vmatprep.subr.bf16.mxu1 %v5262_v11  ;;  %v2072_v29 = vand.u32 4294901760, %v2071_v14 }
 0x314   :  { %3876 = vmatpush3.bf16.msra.mxu0 %v4709_v8  ;;  %v1958_v8 = vand.u32 4294901760, %v1914_v41 }
 0x315   :  { %3877 = vmatprep.subr.bf16.mxu0 %v5262_v11 }
 0x316   :  { %v5014_v12 = vsub.f32 %v1914_v41, %v1958_v8  ;;  %v2065_v41 = vand.u32 4294901760, %v2064_v0  ;;  %v5256_v0 = vand.u32 4294901760, %v5026_v18 }
 0x318   :  { %3879 = vmatpush3.bf16.msra.mxu0 %v4713_v55  ;;  %v5000_v55 = vpack.c.bf16 %v1961_v34, %v1958_v8  ;;  %v2077_v8 = vand.u32 4294901760, %v5010_v38  ;;  %v2084_v34 = vand.u32 4294901760, %v5012_v45  ;;  %v3917_v35 = vpack.c.bf16 %v2072_v29, %v2065_v41 }
 0x319   :  { %3880 = vmatprep.subr.bf16.mxu0 %v5262_v11  ;;  %v5261_v61 = vand.u32 4294901760, %v5014_v12  ;;  %v2120_v41 = vsub.f32 %v5024_v9, %v5257_v20  ;;  %v2127_v29 = vsub.f32 %v5026_v18, %v5256_v0  ;;  %v3947_v28 = vpack.c.bf16 %v5016_v32, %v5014_v12 }
 0x31a   :  { %3900 = vmatpush3.bf16.msra.mxu1 %v5000_v55  ;;  %v5288_v52 = vand.u32 4294901760, %v5014_v12 }
 0x31b   :  { %3901 = vmatprep.subr.bf16.mxu1 %v5262_v11  ;;  %v2092_v23 = vsub.f32 %v5014_v12, %v5261_v61 }
 0x31c   :  { %3882 = vmatpush3.bf16.msra.mxu0 %v4731_v3  ;;  %v1917_v3 = vld [vmem:[#allocation9 + $0x68] sm:$0xff] }
 0x31d   :  { %v1967_v27 = vand.u32 4294901760, %v1917_v3  ;;  %v2093_v44 = vand.u32 4294901760, %v2092_v23  ;;  %v3935_v23 = vpack.c.bf16 %v4862_v58, %v4860_v56  ;;  %v3989_v58 = vpack.c.bf16 %v2070_v50, %v2063_v30 }
 0x31e   :  { %v3995_v56 = vpack.c.bf16 %v5289_v17, %v5288_v52 }
 0x31f   :  { %3365 = vmatmul.mubr.f32.vlgmr.msra.gmra.mrb[4].mxu0 %v4828_v36  ;;  %v5004_v36 = vpack.c.bf16 %v1967_v27, %v1964_v4  ;;  %v5020_v39 = vsub.f32 %v1917_v3, %v1967_v27  ;;  %v2078_v3 = vsub.f32 %v5010_v38, %v2077_v8  ;;  %v2085_v4 = vsub.f32 %v5012_v45, %v2084_v34 }
 0x320   :  { %v3923_v21 = vpack.c.bf16 %v2100_v62, %v2093_v44  ;;  %v3941_v44 = vpack.c.bf16 %v4878_v60, %v4876_v43  ;;  %v3944_v62 = vpack.c.bf16 %v5012_v45, %v5010_v38  ;;  %v5290_v43 = vand.u32 4294901760, %v5018_v33 }
 0x321   :  { %3903 = vmatpush3.bf16.msra.mxu1 %v5004_v36  ;;  %v2079_v27 = vand.u32 4294901760, %v2078_v3  ;;  %v2086_v46 = vand.u32 4294901760, %v2085_v4  ;;  %v5258_v54 = vand.u32 4294901760, %v5020_v39  ;;  %v2121_v3 = vand.u32 4294901760, %v2120_v41 }
 0x322   :  { %3904 = vmatprep.subr.bf16.mxu1 %v5262_v11  ;;  %v2128_v4 = vand.u32 4294901760, %v2127_v29  ;;  %v5291_v60 = vand.u32 4294901760, %v5020_v39  ;;  %v5293_v38 = vand.u32 4294901760, %v5026_v18 }
 0x323   :  { %v3920_v42 = vpack.c.bf16 %v2086_v46, %v2079_v27  ;;  %v2113_v16 = vsub.f32 %v5020_v39, %v5258_v54  ;;  %v3932_v46 = vpack.c.bf16 %v4858_v59, %v4856_v37  ;;  %v3986_v37 = vpack.c.bf16 %v2056_v51, %v2049_v53 }
 0x324   :  { %v3929_v27 = vpack.c.bf16 %v2128_v4, %v2121_v3  ;;  %v3992_v59 = vpack.c.bf16 %v2084_v34, %v2077_v8 }
 0x325   :  { %3906 = vmatpush3.bf16.msra.mxu1 %v5022_v7  ;;  %v2114_v19 = vand.u32 4294901760, %v2113_v16  ;;  %v3950_v16 = vpack.c.bf16 %v5020_v39, %v5018_v33 }
 0x326   :  { %3907 = vmatprep.subr.bf16.mxu1 %v5262_v11 }
 0x327   :  { %v3926_v14 = vpack.c.bf16 %v2114_v19, %v2107_v5  ;;  %v3953_v5 = vpack.c.bf16 %v5026_v18, %v5024_v9  ;;  %v2579_v19 = vld [vmem:[%s5233_s6] ss:$0 sm:$0xff] }
 0x3f2   :  { %v1898_v41 = vpop.f32.mrb[4].mxu0 }
 0x3f3   :  { %v4031_v29 = vadd.f32 %v2579_v19, %v1898_v41  ;;  %v3366_v3 = vpop.f32.mrb[5].mxu0 }
 0x3f5   :  { %v1902_v4 = vmax.f32 %v4031_v29, 0.0 }
 0x3f7   :  { %v1903_v0 = vadd.f32 %v1902_v4, %v4825_v31  ;;  %v3980_v31 = vpack.c.bf16 %v2028_v40, %v2021_v25  ;;  %v3998_v25 = vpack.c.bf16 %v5291_v60, %v5290_v43  ;;  %v5292_v40 = vand.u32 4294901760, %v5024_v9 }
 0x3f9   :  { %v5116_v20 = vand.u32 4294901760, %v1903_v0  ;;  %v4001_v45 = vpack.c.bf16 %v5293_v38, %v5292_v40 }
 0x3fb   :  { %v2009_v54 = vsub.f32 %v1903_v0, %v5116_v20 }
 0x3fd   :  { %v2010_v63 = vand.u32 4294901760, %v2009_v54 }
 0x3ff   :  { %v2011_v2 = vsub.f32 %v2009_v54, %v2010_v63 }
 0x401   :  { %v2012_v61 = vand.u32 4294901760, %v2011_v2 }
 0x403   :  { %3400 = vmatmul.mubr.f32.vlgmr.msra.gmra.mrb[4].mxu1 %v2012_v61 }
 0x404   :  { %3909 = vmatpush3.bf16.msra.mxu1 %v5044_v49  ;;  %3434 = vmatprep.mubr.msk.f32.mxu1 %vm4203_vm0, %v4204_v1  ;;  %v3983_v49 = vpack.c.bf16 %v2042_v48, %v2035_v47 }
 0x405   :  { %3910 = vmatprep.subr.bf16.mxu1 %v5262_v11 }
 0x408   :  { %3912 = vmatpush3.bf16.msra.mxu1 %v5048_v15 }
 0x409   :  { %3913 = vmatprep.subr.bf16.mxu1 %v5262_v11 }
 0x40c   :  { %3915 = vmatpush3.bf16.msra.mxu1 %v3914_v57 }
 0x40d   :  { %3916 = vmatprep.subr.bf16.mxu1 %v5262_v11 }
 0x410   :  { %3918 = vmatpush3.bf16.msra.mxu1 %v3917_v35 }
 0x411   :  { %3919 = vmatprep.subr.bf16.mxu1 %v5262_v11 }
 0x414   :  { %3921 = vmatpush3.bf16.msra.mxu1 %v3920_v42 }
 0x415   :  { %3922 = vmatprep.subr.bf16.mxu1 %v5262_v11 }
 0x418   :  { %3924 = vmatpush3.bf16.msra.mxu1 %v3923_v21 }
 0x419   :  { %3925 = vmatprep.subr.bf16.mxu1 %v5262_v11 }
 0x41c   :  { %3927 = vmatpush3.bf16.msra.mxu1 %v3926_v14 }
 0x41d   :  { %3928 = vmatprep.subr.bf16.mxu1 %v5262_v11 }
 0x420   :  { %3930 = vmatpush3.bf16.msra.mxu1 %v3929_v27 }
 0x421   :  { %3931 = vmatprep.subr.bf16.mxu1 %v5262_v11 }
 0x423   :  { %3435 = vmatmul.mubr.f32.vlgmr.msra.gmra.mrb[4].mxu1 %v5116_v20 }
 0x424   :  { %3933 = vmatpush3.bf16.msra.mxu1 %v3932_v46  ;;  %3469 = vmatprep.mubr.msk.f32.mxu1 %vm4203_vm0, %v4204_v1 }
 0x425   :  { %3934 = vmatprep.subr.bf16.mxu1 %v5262_v11 }
 0x428   :  { %3936 = vmatpush3.bf16.msra.mxu1 %v3935_v23 }
 0x429   :  { %3937 = vmatprep.subr.bf16.mxu1 %v5262_v11 }
 0x42c   :  { %3939 = vmatpush3.bf16.msra.mxu1 %v3938_v22 }
 0x42d   :  { %3940 = vmatprep.subr.bf16.mxu1 %v5262_v11 }
 0x430   :  { %3942 = vmatpush3.bf16.msra.mxu1 %v3941_v44 }
 0x431   :  { %3943 = vmatprep.subr.bf16.mxu1 %v5262_v11 }
 0x434   :  { %3945 = vmatpush3.bf16.msra.mxu1 %v3944_v62 }
 0x435   :  { %3946 = vmatprep.subr.bf16.mxu1 %v5262_v11 }
 0x438   :  { %3948 = vmatpush3.bf16.msra.mxu1 %v3947_v28 }
 0x439   :  { %3949 = vmatprep.subr.bf16.mxu1 %v5262_v11 }
 0x43c   :  { %3951 = vmatpush3.bf16.msra.mxu1 %v3950_v16 }
 0x43d   :  { %3952 = vmatprep.subr.bf16.mxu1 %v5262_v11 }
 0x440   :  { %3954 = vmatpush3.bf16.msra.mxu1 %v3953_v5 }
 0x441   :  { %3955 = vmatprep.subr.bf16.mxu1 %v5262_v11 }
 0x443   :  { %3470 = vmatmul.mubr.f32.vlgmr.msra.gmra.mrb[4].mxu1 %v2009_v54 }
 0x444   :  { %3957 = vmatpush3.bf16.msra.mxu1 %v4854_v26  ;;  %3504 = vmatprep.mubr.msk.f32.mxu1 %vm4203_vm0, %v4204_v1 }
 0x445   :  { %3958 = vmatprep.subr.bf16.mxu1 %v5262_v11 }
 0x448   :  { %3960 = vmatpush3.bf16.msra.mxu1 %v4870_v13 }
 0x449   :  { %3961 = vmatprep.subr.bf16.mxu1 %v5262_v11 }
 0x44c   :  { %3963 = vmatpush3.bf16.msra.mxu1 %v4884_v10 }
 0x44d   :  { %3964 = vmatprep.subr.bf16.mxu1 %v5262_v11 }
 0x450   :  { %3966 = vmatpush3.bf16.msra.mxu1 %v4892_v6 }
 0x451   :  { %3967 = vmatprep.subr.bf16.mxu1 %v5262_v11 }
 0x454   :  { %3969 = vmatpush3.bf16.msra.mxu1 %v4996_v24 }
 0x455   :  { %3970 = vmatprep.subr.bf16.mxu1 %v5262_v11 }
 0x458   :  { %3972 = vmatpush3.bf16.msra.mxu1 %v5000_v55 }
 0x459   :  { %3973 = vmatprep.subr.bf16.mxu1 %v5262_v11 }
 0x45c   :  { %3975 = vmatpush3.bf16.msra.mxu1 %v5004_v36 }
 0x45d   :  { %3976 = vmatprep.subr.bf16.mxu1 %v5262_v11 }
 0x460   :  { %3978 = vmatpush3.bf16.msra.mxu1 %v5022_v7 }
 0x461   :  { %3979 = vmatprep.subr.bf16.mxu1 %v5262_v11 }
 0x463   :  { %3505 = vmatmul.mubr.f32.vlgmr.msra.gmra.mrb[4].mxu1 %v2010_v63 }
 0x464   :  { %3981 = vmatpush3.bf16.msra.mxu1 %v3980_v31  ;;  %3539 = vmatprep.mubr.msk.f32.mxu1 %vm4203_vm0, %v4204_v1 }
 0x465   :  { %3982 = vmatprep.subr.bf16.mxu1 %v5262_v11 }
 0x468   :  { %3984 = vmatpush3.bf16.msra.mxu1 %v3983_v49 }
 0x469   :  { %3985 = vmatprep.subr.bf16.mxu1 %v5262_v11 }
 0x46c   :  { %3987 = vmatpush3.bf16.msra.mxu1 %v3986_v37 }
 0x46d   :  { %3988 = vmatprep.subr.bf16.mxu1 %v5262_v11 }
 0x470   :  { %3990 = vmatpush3.bf16.msra.mxu1 %v3989_v58 }
 0x471   :  { %3991 = vmatprep.subr.bf16.mxu1 %v5262_v11 }
 0x474   :  { %3993 = vmatpush3.bf16.msra.mxu1 %v3992_v59 }
 0x475   :  { %3994 = vmatprep.subr.bf16.mxu1 %v5262_v11 }
 0x478   :  { %3996 = vmatpush3.bf16.msra.mxu1 %v3995_v56 }
 0x479   :  { %3997 = vmatprep.subr.bf16.mxu1 %v5262_v11 }
 0x47c   :  { %3999 = vmatpush3.bf16.msra.mxu1 %v3998_v25 }
 0x47d   :  { %4000 = vmatprep.subr.bf16.mxu1 %v5262_v11 }
 0x480   :  { %4002 = vmatpush3.bf16.msra.mxu1 %v4001_v45 }
 0x481   :  { %4003 = vmatprep.subr.bf16.mxu1 %v5262_v11 }
 0x483   :  { %3540 = vmatmul.mubr.f32.vlgmr.msra.gmra.mrb[4].mxu1 %v5116_v20 }
 0x484   :  { %4005 = vmatpush3.bf16.msra.mxu1 %v4854_v26  ;;  %3574 = vmatprep.mubr.msk.f32.mxu1 %vm4203_vm0, %v4204_v1  ;;  %v2580_v1 = vld [vmem:[%s5235_s8] ss:$0 sm:$0xff] }
 0x485   :  { %4006 = vmatprep.subr.bf16.mxu1 %v5262_v11 }
 0x488   :  { %4008 = vmatpush3.bf16.msra.mxu1 %v4870_v13 }
 0x489   :  { %4009 = vmatprep.subr.bf16.mxu1 %v5262_v11 }
 0x48c   :  { %4011 = vmatpush3.bf16.msra.mxu1 %v4884_v10 }
 0x48d   :  { %4012 = vmatprep.subr.bf16.mxu1 %v5262_v11 }
 0x490   :  { %4014 = vmatpush3.bf16.msra.mxu1 %v4892_v6 }
 0x491   :  { %4015 = vmatprep.subr.bf16.mxu1 %v5262_v11 }
 0x494   :  { %4017 = vmatpush3.bf16.msra.mxu1 %v4996_v24 }
 0x495   :  { %4018 = vmatprep.subr.bf16.mxu1 %v5262_v11 }
 0x498   :  { %4020 = vmatpush3.bf16.msra.mxu1 %v5000_v55 }
 0x499   :  { %4021 = vmatprep.subr.bf16.mxu1 %v5262_v11 }
 0x49c   :  { %4023 = vmatpush3.bf16.msra.mxu1 %v5004_v36 }
 0x49d   :  { %4024 = vmatprep.subr.bf16.mxu1 %v5262_v11 }
 0x4a0   :  { %4026 = vmatpush3.bf16.msra.mxu1 %v5022_v7 }
 0x4a3   :  { %3575 = vmatmul.mubr.f32.vlgmr.msra.gmra.mrb[4].mxu1 %v5116_v20 }
 0x576   :  { %v2564_v13 = vpop.f32.mrb[4].mxu1 }
 0x577   :  { %v4032_v26 = vadd.f32 %v2580_v1, %v2564_v13  ;;  %v3576_v10 = vpop.f32.mrb[5].mxu1 }
 0x579   :  { %2569 = vst.msk [vmem:[%s5236_s9] sm:$0xff] %vm2568_vm2, %v4032_v26 }
 0x57a   :  { %2574 = vsyncpa [#allocation3], 1 }
 0x57b   :  { %2575 = vsyncpa [#allocation5], 1 }
 0x57c   :  { %2576 = vsyncpa [#allocation8], 1 }

</bundles_post_ra>
